<compile_context>
chip_gen: v7x
topology: tpu7x:2x2x1
jax: 0.10.0
libtpu: 0.0.40
codegen_flags: <defaults>
</compile_context>

<pallas_src>
import jax
import jax.numpy as jnp
from jax.experimental import pallas as pl
from jax.experimental.pallas import tpu as pltpu


def _xca_kernel(x_ref, wq_ref, wk_ref, wv_ref, wproj_ref, bproj_ref,
                ktemp_ref, mask_ref, o_ref):
    """One grid step: XCA for a (Bt, N, C) slab of the batch."""
    bt, n, c = x_ref.shape
    cpad = o_ref.shape[-1]

    # Fold batch into the matmul M dimension; bf16 MXU operands, f32 accum.
    x2d = x_ref[...].reshape(bt * n, c).astype(jnp.bfloat16)

    # q / k / v projections (qkv_bias=False): lane-aligned (Bt*N, C) slabs.
    q = jnp.dot(x2d, wq_ref[...], preferred_element_type=jnp.float32)
    k = jnp.dot(x2d, wk_ref[...], preferred_element_type=jnp.float32)
    v = jnp.dot(x2d, wv_ref[...], preferred_element_type=jnp.float32)

    q = q.reshape(bt, n, c)
    k = k.reshape(bt, n, c)

    # F.normalize along the token axis (eps = 1e-12), in f32:
    #   1 / max(||col||, eps) == rsqrt(max(sum(col^2), eps^2))   (EUP rsqrt)
    # The per-head temperature is folded into k's per-column scale so there is
    # no separate (C x C) temperature pass on the attention matrix (inside a
    # head block temp[e] == temp[d]; off-block entries are masked anyway).
    q_scale = jax.lax.rsqrt(
        jnp.maximum(jnp.sum(q * q, axis=1, keepdims=True), 1e-24))
    k_scale = jax.lax.rsqrt(
        jnp.maximum(jnp.sum(k * k, axis=1, keepdims=True), 1e-24))
    k_scale = k_scale * ktemp_ref[...].reshape(1, 1, c)

    qn = (q * q_scale).astype(jnp.bfloat16)                        # (Bt, N, C)
    knT = jnp.swapaxes(k * k_scale, -1, -2).astype(jnp.bfloat16)   # (Bt, C, N)

    # Whole-C cross-covariance, transposed so BOTH attention matmuls are
    # MXU-native (lhs contracts its last axis, rhs its sublane axis); the only
    # explicit transpose is the single knT above.
    #   aT[b, e, d] = sum_n k[b, n, e] * q[b, n, d]   (== attn[b, d, e])
    aT = jnp.einsum('ben,bnd->bed', knT, qn,
                    preferred_element_type=jnp.float32)            # (Bt, C, C)

    # Block-diagonal head mask (additive 0 / -1e30), precomputed on the host
    # and DMA'd once (constant block index). Symmetric, so (e, d) order is ok.
    aT = aT + mask_ref[...]

    # Softmax of attn over e == axis 1 of aT, in f32. The in-block max
    # contributes exp(0)=1, so the denominator is >= 1 and the EUP approximate
    # reciprocal is safe; masked entries underflow to exactly 0.
    aT = aT - jnp.max(aT, axis=1, keepdims=True)
    aT = jnp.exp(aT)
    aT = aT * pl.reciprocal(jnp.sum(aT, axis=1, keepdims=True), approx=True)

    # xo[b, n, d] = sum_e v[b, n, e] * aT[b, e, d]   (masked entries are 0)
    xo = jnp.einsum('bne,bed->bnd',
                    v.reshape(bt, n, c).astype(jnp.bfloat16),
                    aT.astype(jnp.bfloat16),
                    preferred_element_type=jnp.float32)            # (Bt, N, C)

    # Output projection (bias added in f32); out-channels are padded to a
    # multiple of 128 in the wrapper so this store is lane-dense.
    o2d = jnp.dot(xo.reshape(bt * n, c).astype(jnp.bfloat16), wproj_ref[...],
                  preferred_element_type=jnp.float32) + bproj_ref[...]
    o_ref[...] = o2d.reshape(bt, n, cpad).astype(o_ref.dtype)


def _vmem_capacity_bytes():
    try:
        return int(pltpu.get_tpu_info().vmem_capacity_bytes)
    except Exception:
        return 64 * 1024 * 1024            # v7x per-TC physical (smallest)


def _tensorcores_per_device():
    # Megacore heuristic (perf-only): v7x / v4 / v5p expose 2 TensorCores per
    # device; v5e / v6e are single-core.
    try:
        kind = jax.devices()[0].device_kind.lower()
    except Exception:
        return 1
    if "v7" in kind or "7x" in kind or "v4" in kind or "v5p" in kind:
        return 2
    return 1


def _vmem_estimate_bytes(batch_tile, n, c, cpad, x_bytes, out_bytes):
    """Rough upper bound on kernel VMEM use for one grid step."""
    slab = batch_tile * n
    # Double-buffered pipeline slabs for x and the padded output.
    pipeline = 2 * slab * c * x_bytes + 2 * slab * cpad * out_bytes
    # In-kernel temporaries: q/k/v/xo in f32 plus their bf16 MXU copies, the
    # projected (Bt*N, Cpad) f32 result, and the (C, C) attention tile.
    temps = slab * c * (4 * 4 + 4 * 2) + slab * cpad * 4
    attn = batch_tile * c * c * (4 + 2)
    # Constant-index inputs (bf16 weights, f32 mask/bias/temp), still
    # double-buffered by default.
    consts = 2 * ((3 * c * c + c * cpad) * 2 + c * c * 4 + (cpad + c) * 4)
    return pipeline + temps + attn + consts


def _pick_batch_tile(B, n, c, cpad, x_bytes, out_bytes, n_cores, budget):
    """Largest batch tile that fits the VMEM budget while keeping >= 2 grid
    steps per TensorCore (when B allows) for megacore sharding + pipelining.
    Single-TC parts with small B get one grid step (no pointless split)."""
    target_steps = min(2 * n_cores, B) if n_cores > 1 else 1
    for bt in sorted((d for d in range(1, B + 1) if B % d == 0), reverse=True):
        if B // bt < target_steps:
            continue
        if _vmem_estimate_bytes(bt, n, c, cpad, x_bytes, out_bytes) <= budget:
            return bt
    return 1


def old_xca_forward(x, w_qkv, w_proj, b_proj, temperature, num_heads,
                    batch_tile=None):
    B, N, C = x.shape
    Cout = w_proj.shape[1]
    Dh = C // num_heads

    # Pre-split the fused qkv weight so the kernel never slices at sub-vreg
    # lane offsets, and store all MXU weight operands in bf16 (rated MXU path
    # on every generation, half the double-buffered weight VMEM).
    w_q = w_qkv[:, :C].astype(jnp.bfloat16)
    w_k = w_qkv[:, C:2 * C].astype(jnp.bfloat16)
    w_v = w_qkv[:, 2 * C:].astype(jnp.bfloat16)

    # Per-head temperature -> per-channel (1, C) vector, folded into k's
    # normalization scale inside the kernel.
    ktemp = jnp.repeat(temperature.reshape(num_heads), Dh).reshape(1, C)
    ktemp = ktemp.astype(jnp.float32)

    # Block-diagonal head mask as an additive bias, built once on the host.
    head_id = jnp.arange(C, dtype=jnp.int32) // Dh
    mask = jnp.where(head_id[:, None] == head_id[None, :],
                     jnp.float32(0.0), jnp.float32(-1e30))

    # Lane-dense output: pad the projection to a multiple of 128 out-channels.
    Cpad = ((Cout + 127) // 128) * 128
    b2d = b_proj.reshape(1, -1).astype(jnp.float32)
    w_proj_bf = w_proj.astype(jnp.bfloat16)
    if Cpad != Cout:
        w_proj_p = jnp.zeros((C, Cpad), jnp.bfloat16).at[:, :Cout].set(w_proj_bf)
        b_proj_p = jnp.zeros((1, Cpad), jnp.float32).at[:, :Cout].set(b2d)
    else:
        w_proj_p = w_proj_bf
        b_proj_p = b2d

    x_bytes = x.dtype.itemsize
    out_bytes = x.dtype.itemsize
    budget = min(int(0.6 * _vmem_capacity_bytes()), 48 * 1024 * 1024)
    if batch_tile is None:
        batch_tile = _pick_batch_tile(B, N, C, Cpad, x_bytes, out_bytes,
                                      _tensorcores_per_device(), budget)
    grid = (B // batch_tile,)

    est = _vmem_estimate_bytes(batch_tile, N, C, Cpad, x_bytes, out_bytes)
    vmem_limit = int(min(max(2 * est, 16 * 1024 * 1024), 48 * 1024 * 1024))

    # Advisory cost estimate: qkv + two C-wide attention matmuls + projection.
    flops = 2 * B * N * C * (5 * C + Cpad)
    transcendentals = B * C * C + 3 * B * C
    bytes_accessed = (x.size * x_bytes + B * N * Cpad * out_bytes
                      + (3 * C * C + C * Cpad) * 2      # bf16 weights
                      + C * C * 4 + (Cpad + C) * 4)     # mask, bias, temp

    # TODO(synk): single-buffer the constant-index weight/mask blocks with
    # pipeline_mode=pl.Buffered(1) once validated on the target jax version;
    # storing them bf16 already halves that dead VMEM.
    # TODO(synk): for production N*C where one batch element exceeds the VMEM
    # budget, the token axis cannot simply become a grid axis (the L2 norm and
    # the cross-covariance both reduce over N) -- it needs a two-pass /
    # accumulator scheme over N-tiles.
    # TODO(synk): at production C with Dh >= 128, switch to head-batched
    # (Bt*H, N, Dh) attention without the block mask; the whole-C
    # block-diagonal trick is only the right call for small Dh (here Dh=8).
    out = pl.pallas_call(
        _xca_kernel,
        out_shape=jax.ShapeDtypeStruct((B, N, Cpad), x.dtype),
        grid_spec=pltpu.PrefetchScalarGridSpec(
            num_scalar_prefetch=0,
            grid=grid,
            in_specs=[
                pl.BlockSpec((batch_tile, N, C), lambda i: (i, 0, 0)),  # x
                pl.BlockSpec((C, C), lambda i: (0, 0)),                 # W_q
                pl.BlockSpec((C, C), lambda i: (0, 0)),                 # W_k
                pl.BlockSpec((C, C), lambda i: (0, 0)),                 # W_v
                pl.BlockSpec((C, Cpad), lambda i: (0, 0)),              # W_proj
                pl.BlockSpec((1, Cpad), lambda i: (0, 0)),              # b_proj
                pl.BlockSpec((1, C), lambda i: (0, 0)),                 # temp/ch
                pl.BlockSpec((C, C), lambda i: (0, 0)),                 # mask
            ],
            out_specs=pl.BlockSpec((batch_tile, N, Cpad),
                                   lambda i: (i, 0, 0)),
        ),
        compiler_params=pltpu.CompilerParams(
            dimension_semantics=("parallel",),
            vmem_limit_bytes=vmem_limit),
        cost_estimate=pl.CostEstimate(flops=flops,
                                      transcendentals=transcendentals,
                                      bytes_accessed=bytes_accessed),
    )(x, w_q, w_k, w_v, w_proj_p, b_proj_p, ktemp, mask)
    return out[..., :Cout] if Cpad != Cout else out


def ref_forward(x, w_qkv, w_proj, b_proj, temperature, num_heads):
    """Pure-JAX (f32) mirror of the PyTorch forward, for verification."""
    B, N, C = x.shape
    Dh = C // num_heads
    qkv = x @ w_qkv
    qkv = qkv.reshape(B, N, 3, num_heads, Dh).transpose(2, 0, 3, 1, 4)
    q, k, v = qkv[0], qkv[1], qkv[2]               # (B, H, N, Dh)
    q = jnp.swapaxes(q, -2, -1)                    # (B, H, Dh, N)
    k = jnp.swapaxes(k, -2, -1)
    v = jnp.swapaxes(v, -2, -1)
    q = q / jnp.maximum(jnp.linalg.norm(q, axis=-1, keepdims=True), 1e-12)
    k = k / jnp.maximum(jnp.linalg.norm(k, axis=-1, keepdims=True), 1e-12)
    attn = (q @ jnp.swapaxes(k, -2, -1)) * temperature.reshape(1, num_heads, 1, 1)
    attn = jax.nn.softmax(attn, axis=-1)
    out = (attn @ v).transpose(0, 3, 1, 2).reshape(B, N, C)
    return out @ w_proj + b_proj.reshape(1, -1)


if __name__ == "__main__":
    B, N, C = 2, 128, 64
    num_heads = 8
    out_dim = C  # out_dim defaults to dim in the module

    key = jax.random.PRNGKey(0)
    kx, kqkv, kp, kb = jax.random.split(key, 4)

    x = jax.random.normal(kx, (B, N, C), dtype=jnp.float32)
    # nn.Linear weights, stored pre-transposed as (in, out).
    w_qkv = 0.02 * jax.random.normal(kqkv, (C, 3 * C), dtype=jnp.float32)
    w_proj = 0.02 * jax.random.normal(kp, (C, out_dim), dtype=jnp.float32)
    b_proj = 0.01 * jax.random.normal(kb, (1, out_dim), dtype=jnp.float32)
    # nn.Parameter(torch.ones(num_heads, 1, 1)) -> flat (num_heads,)
    temperature = jnp.ones((num_heads,), dtype=jnp.float32)

    out = old_xca_forward(x, w_qkv, w_proj, b_proj, temperature, num_heads)
    out = jax.block_until_ready(out)

    ref = ref_forward(x, w_qkv, w_proj, b_proj, temperature, num_heads)
    assert out.shape == (B, N, out_dim)
    # bf16 MXU operands + approx-reciprocal softmax denominator -> looser tol.
    assert jnp.allclose(out, ref, atol=1e-2, rtol=2e-2), "mismatch vs reference"

    print("KERNEL_OK")
</pallas_src>

<mosaic_0001>
module attributes {stable_mosaic.version = 11 : i64} {
  func.func @_xca_kernel(%arg0: i32, %arg1: memref<2x128x64xf32, #tpu.memory_space<vmem>>, %arg2: memref<64x64xbf16, #tpu.memory_space<vmem>>, %arg3: memref<64x64xbf16, #tpu.memory_space<vmem>>, %arg4: memref<64x64xbf16, #tpu.memory_space<vmem>>, %arg5: memref<64x128xbf16, #tpu.memory_space<vmem>>, %arg6: memref<1x128xf32, #tpu.memory_space<vmem>>, %arg7: memref<1x64xf32, #tpu.memory_space<vmem>>, %arg8: memref<64x64xf32, #tpu.memory_space<vmem>>, %arg9: memref<2x128x128xf32, #tpu.memory_space<vmem>>) attributes {dimension_semantics = [#tpu.dimension_semantics<parallel>], iteration_bounds = array<i64: 1>, scalar_prefetch = 0 : i64, scratch_operands = 0 : i64, tpu.core_type = #tpu.core_type<tc>, window_params = [{transform_indices = @transform_0, window_bounds = array<i64: 2, 128, 64>}, {pipeline_mode = #tpu.pipeline_mode<synchronous>, transform_indices = @transform_1, window_bounds = array<i64: 64, 64>}, {pipeline_mode = #tpu.pipeline_mode<synchronous>, transform_indices = @transform_2, window_bounds = array<i64: 64, 64>}, {pipeline_mode = #tpu.pipeline_mode<synchronous>, transform_indices = @transform_3, window_bounds = array<i64: 64, 64>}, {pipeline_mode = #tpu.pipeline_mode<synchronous>, transform_indices = @transform_4, window_bounds = array<i64: 64, 128>}, {pipeline_mode = #tpu.pipeline_mode<synchronous>, transform_indices = @transform_5, window_bounds = array<i64: 1, 128>}, {pipeline_mode = #tpu.pipeline_mode<synchronous>, transform_indices = @transform_6, window_bounds = array<i64: 1, 64>}, {pipeline_mode = #tpu.pipeline_mode<synchronous>, transform_indices = @transform_7, window_bounds = array<i64: 64, 64>}, {transform_indices = @transform_8, window_bounds = array<i64: 2, 128, 128>}]} {
    %c0 = arith.constant 0 : index
    %c0_0 = arith.constant 0 : index
    %c0_1 = arith.constant 0 : index
    %0 = vector.load %arg1[%c0, %c0_0, %c0_1] : memref<2x128x64xf32, #tpu.memory_space<vmem>>, vector<2x128x64xf32>
    %1 = vector.shape_cast %0 : vector<2x128x64xf32> to vector<256x64xf32>
    %2 = arith.truncf %1 : vector<256x64xf32> to vector<256x64xbf16>
    %c0_2 = arith.constant 0 : index
    %c0_3 = arith.constant 0 : index
    %3 = vector.load %arg2[%c0_2, %c0_3] : memref<64x64xbf16, #tpu.memory_space<vmem>>, vector<64x64xbf16>
    %cst = arith.constant dense<0.000000e+00> : vector<256x64xf32>
    %4 = tpu.matmul %2, %3, %cst {dimension_numbers = #tpu.dot_dimension_numbers<[1], [0], [0], [1], [0, 0, 1, 1], [], []>} : vector<256x64xbf16>, vector<64x64xbf16>, vector<256x64xf32> -> vector<256x64xf32>
    %c0_4 = arith.constant 0 : index
    %c0_5 = arith.constant 0 : index
    %5 = vector.load %arg3[%c0_4, %c0_5] : memref<64x64xbf16, #tpu.memory_space<vmem>>, vector<64x64xbf16>
    %cst_6 = arith.constant dense<0.000000e+00> : vector<256x64xf32>
    %6 = tpu.matmul %2, %5, %cst_6 {dimension_numbers = #tpu.dot_dimension_numbers<[1], [0], [0], [1], [0, 0, 1, 1], [], []>} : vector<256x64xbf16>, vector<64x64xbf16>, vector<256x64xf32> -> vector<256x64xf32>
    %c0_7 = arith.constant 0 : index
    %c0_8 = arith.constant 0 : index
    %7 = vector.load %arg4[%c0_7, %c0_8] : memref<64x64xbf16, #tpu.memory_space<vmem>>, vector<64x64xbf16>
    %cst_9 = arith.constant dense<0.000000e+00> : vector<256x64xf32>
    %8 = tpu.matmul %2, %7, %cst_9 {dimension_numbers = #tpu.dot_dimension_numbers<[1], [0], [0], [1], [0, 0, 1, 1], [], []>} : vector<256x64xbf16>, vector<64x64xbf16>, vector<256x64xf32> -> vector<256x64xf32>
    %9 = vector.shape_cast %4 : vector<256x64xf32> to vector<2x128x64xf32>
    %10 = vector.shape_cast %6 : vector<256x64xf32> to vector<2x128x64xf32>
    %11 = arith.mulf %9, %9 : vector<2x128x64xf32>
    %cst_10 = arith.constant dense<0.000000e+00> : vector<2x64xf32>
    %12 = vector.multi_reduction <add>, %11, %cst_10 [1] : vector<2x128x64xf32> to vector<2x64xf32>
    %13 = vector.shape_cast %12 : vector<2x64xf32> to vector<2x1x64xf32>
    %cst_11 = arith.constant 1.000000e-24 : f32
    %14 = vector.broadcast %cst_11 : f32 to vector<2x1x64xf32>
    %15 = arith.maximumf %13, %14 : vector<2x1x64xf32>
    %16 = math.rsqrt %15 : vector<2x1x64xf32>
    %17 = arith.mulf %10, %10 : vector<2x128x64xf32>
    %cst_12 = arith.constant dense<0.000000e+00> : vector<2x64xf32>
    %18 = vector.multi_reduction <add>, %17, %cst_12 [1] : vector<2x128x64xf32> to vector<2x64xf32>
    %19 = vector.shape_cast %18 : vector<2x64xf32> to vector<2x1x64xf32>
    %cst_13 = arith.constant 1.000000e-24 : f32
    %20 = vector.broadcast %cst_13 : f32 to vector<2x1x64xf32>
    %21 = arith.maximumf %19, %20 : vector<2x1x64xf32>
    %22 = math.rsqrt %21 : vector<2x1x64xf32>
    %c0_14 = arith.constant 0 : index
    %c0_15 = arith.constant 0 : index
    %23 = vector.load %arg7[%c0_14, %c0_15] : memref<1x64xf32, #tpu.memory_space<vmem>>, vector<1x64xf32>
    %24 = vector.shape_cast %23 : vector<1x64xf32> to vector<1x1x64xf32>
    %25 = vector.broadcast %24 : vector<1x1x64xf32> to vector<2x1x64xf32>
    %26 = arith.mulf %22, %25 : vector<2x1x64xf32>
    %27 = vector.broadcast %16 : vector<2x1x64xf32> to vector<2x128x64xf32>
    %28 = arith.mulf %9, %27 : vector<2x128x64xf32>
    %29 = arith.truncf %28 : vector<2x128x64xf32> to vector<2x128x64xbf16>
    %30 = vector.broadcast %26 : vector<2x1x64xf32> to vector<2x128x64xf32>
    %31 = arith.mulf %10, %30 : vector<2x128x64xf32>
    %32 = tpu.transpose %31, [0, 2, 1] : vector<2x128x64xf32> -> vector<2x64x128xf32>
    %33 = arith.truncf %32 : vector<2x64x128xf32> to vector<2x64x128xbf16>
    "tpu.trace_start"() <{level = 10 : i32, message = "ben,bnd->bed"}> : () -> ()
    %cst_16 = arith.constant dense<0.000000e+00> : vector<2x64x64xf32>
    %34 = tpu.matmul %33, %29, %cst_16 {dimension_numbers = #tpu.dot_dimension_numbers<[2], [1], [1], [2], [0, 0, 0, 1, 1, 2], [0], [0]>} : vector<2x64x128xbf16>, vector<2x128x64xbf16>, vector<2x64x64xf32> -> vector<2x64x64xf32>
    "tpu.trace_stop"() : () -> ()
    %c0_17 = arith.constant 0 : index
    %c0_18 = arith.constant 0 : index
    %35 = vector.load %arg8[%c0_17, %c0_18] : memref<64x64xf32, #tpu.memory_space<vmem>>, vector<64x64xf32>
    %36 = vector.shape_cast %35 : vector<64x64xf32> to vector<1x64x64xf32>
    %37 = vector.broadcast %36 : vector<1x64x64xf32> to vector<2x64x64xf32>
    %38 = arith.addf %34, %37 : vector<2x64x64xf32>
    %cst_19 = arith.constant dense<0xFF800000> : vector<2x64xf32>
    %39 = vector.multi_reduction <maximumf>, %38, %cst_19 [1] : vector<2x64x64xf32> to vector<2x64xf32>
    %40 = vector.shape_cast %39 : vector<2x64xf32> to vector<2x1x64xf32>
    %41 = vector.broadcast %40 : vector<2x1x64xf32> to vector<2x64x64xf32>
    %42 = arith.subf %38, %41 : vector<2x64x64xf32>
    %43 = math.exp %42 : vector<2x64x64xf32>
    %cst_20 = arith.constant dense<0.000000e+00> : vector<2x64xf32>
    %44 = vector.multi_reduction <add>, %43, %cst_20 [1] : vector<2x64x64xf32> to vector<2x64xf32>
    %45 = vector.shape_cast %44 : vector<2x64xf32> to vector<2x1x64xf32>
    %46 = tpu.reciprocal %45 {approx = true} : vector<2x1x64xf32> -> vector<2x1x64xf32>
    %47 = vector.broadcast %46 : vector<2x1x64xf32> to vector<2x64x64xf32>
    %48 = arith.mulf %43, %47 : vector<2x64x64xf32>
    %49 = vector.shape_cast %8 : vector<256x64xf32> to vector<2x128x64xf32>
    %50 = arith.truncf %49 : vector<2x128x64xf32> to vector<2x128x64xbf16>
    %51 = arith.truncf %48 : vector<2x64x64xf32> to vector<2x64x64xbf16>
    "tpu.trace_start"() <{level = 10 : i32, message = "bne,bed->bnd"}> : () -> ()
    %cst_21 = arith.constant dense<0.000000e+00> : vector<2x128x64xf32>
    %52 = tpu.matmul %50, %51, %cst_21 {dimension_numbers = #tpu.dot_dimension_numbers<[2], [1], [1], [2], [0, 0, 0, 1, 1, 2], [0], [0]>} : vector<2x128x64xbf16>, vector<2x64x64xbf16>, vector<2x128x64xf32> -> vector<2x128x64xf32>
    "tpu.trace_stop"() : () -> ()
    %53 = vector.shape_cast %52 : vector<2x128x64xf32> to vector<256x64xf32>
    %54 = arith.truncf %53 : vector<256x64xf32> to vector<256x64xbf16>
    %c0_22 = arith.constant 0 : index
    %c0_23 = arith.constant 0 : index
    %55 = vector.load %arg5[%c0_22, %c0_23] : memref<64x128xbf16, #tpu.memory_space<vmem>>, vector<64x128xbf16>
    %cst_24 = arith.constant dense<0.000000e+00> : vector<256x128xf32>
    %56 = tpu.matmul %54, %55, %cst_24 {dimension_numbers = #tpu.dot_dimension_numbers<[1], [0], [0], [1], [0, 0, 1, 1], [], []>} : vector<256x64xbf16>, vector<64x128xbf16>, vector<256x128xf32> -> vector<256x128xf32>
    %c0_25 = arith.constant 0 : index
    %c0_26 = arith.constant 0 : index
    %57 = vector.load %arg6[%c0_25, %c0_26] : memref<1x128xf32, #tpu.memory_space<vmem>>, vector<1x128xf32>
    %58 = vector.broadcast %57 : vector<1x128xf32> to vector<256x128xf32>
    %59 = arith.addf %56, %58 : vector<256x128xf32>
    %60 = vector.shape_cast %59 : vector<256x128xf32> to vector<2x128x128xf32>
    %c0_27 = arith.constant 0 : index
    %c0_28 = arith.constant 0 : index
    %c0_29 = arith.constant 0 : index
    %61 = vector.load %arg9[%c0_27, %c0_28, %c0_29] : memref<2x128x128xf32, #tpu.memory_space<vmem>>, vector<2x128x128xf32>
    tpu.vector_store %arg9[%c0_27, %c0_28, %c0_29], %60 {strides = array<i32>} : memref<2x128x128xf32, #tpu.memory_space<vmem>>, vector<2x128x128xf32>,
    return
  }
  func.func @transform_0(%arg0: i32) -> (i32, i32, i32) {
    %c0_i32 = arith.constant 0 : i32
    %c0_i32_0 = arith.constant 0 : i32
    %c0_i32_1 = arith.constant 0 : i32
    return %arg0, %c0_i32, %c0_i32_0 : i32, i32, i32
  }
  func.func @transform_1(%arg0: i32) -> (i32, i32) {
    %c0_i32 = arith.constant 0 : i32
    %c0_i32_0 = arith.constant 0 : i32
    %c0_i32_1 = arith.constant 0 : i32
    return %c0_i32, %c0_i32_0 : i32, i32
  }
  func.func @transform_2(%arg0: i32) -> (i32, i32) {
    %c0_i32 = arith.constant 0 : i32
    %c0_i32_0 = arith.constant 0 : i32
    %c0_i32_1 = arith.constant 0 : i32
    return %c0_i32, %c0_i32_0 : i32, i32
  }
  func.func @transform_3(%arg0: i32) -> (i32, i32) {
    %c0_i32 = arith.constant 0 : i32
    %c0_i32_0 = arith.constant 0 : i32
    %c0_i32_1 = arith.constant 0 : i32
    return %c0_i32, %c0_i32_0 : i32, i32
  }
  func.func @transform_4(%arg0: i32) -> (i32, i32) {
    %c0_i32 = arith.constant 0 : i32
    %c0_i32_0 = arith.constant 0 : i32
    %c0_i32_1 = arith.constant 0 : i32
    return %c0_i32, %c0_i32_0 : i32, i32
  }
  func.func @transform_5(%arg0: i32) -> (i32, i32) {
    %c0_i32 = arith.constant 0 : i32
    %c0_i32_0 = arith.constant 0 : i32
    %c0_i32_1 = arith.constant 0 : i32
    return %c0_i32, %c0_i32_0 : i32, i32
  }
  func.func @transform_6(%arg0: i32) -> (i32, i32) {
    %c0_i32 = arith.constant 0 : i32
    %c0_i32_0 = arith.constant 0 : i32
    %c0_i32_1 = arith.constant 0 : i32
    return %c0_i32, %c0_i32_0 : i32, i32
  }
  func.func @transform_7(%arg0: i32) -> (i32, i32) {
    %c0_i32 = arith.constant 0 : i32
    %c0_i32_0 = arith.constant 0 : i32
    %c0_i32_1 = arith.constant 0 : i32
    return %c0_i32, %c0_i32_0 : i32, i32
  }
  func.func @transform_8(%arg0: i32) -> (i32, i32, i32) {
    %c0_i32 = arith.constant 0 : i32
    %c0_i32_0 = arith.constant 0 : i32
    %c0_i32_1 = arith.constant 0 : i32
    return %arg0, %c0_i32, %c0_i32_0 : i32, i32, i32
  }
}

</mosaic_0001>

<bundles_post_ra>
// kernel: tpu_custom_call.1
= control target key start
LH: loop header
LB: loop body
LE: loop exit
PB: predicated region body
PF: predicated region fallthrough
CT: control target
= control target key end

     0   :  { %vm111_vm0 = vcmask 523264   ;;  %s3681_s0 = inlined_call_operand.vmem [shape: f32[2,128,64], index: 0, kind: input, shape index: {}]   ;;  %s3682_s1 = inlined_call_operand.vmem [shape: bf16[64,64], index: 1, kind: input, shape index: {}]   ;;  %s3683_s2 = inlined_call_operand.vmem [shape: bf16[64,64], index: 2, kind: input, shape index: {}]   ;;  %s3684_s3 = inlined_call_operand.vmem [shape: bf16[64,64], index: 3, kind: input, shape index: {}]   ;;  %s3685_s4 = inlined_call_operand.vmem [shape: bf16[64,128], index: 4, kind: input, shape index: {}]   ;;  %s3686_s5 = inlined_call_operand.vmem [shape: f32[1,128], index: 5, kind: input, shape index: {}]   ;;  %s3687_s6 = inlined_call_operand.vmem [shape: f32[1,64], index: 6, kind: input, shape index: {}]   ;;  %s3688_s7 = inlined_call_operand.vmem [shape: f32[64,64], index: 7, kind: input, shape index: {}]   ;;  %s3689_s8 = inlined_call_operand.hbm [shape: f32[2,128,128], index: 8, kind: output, shape index: {}]  }
   0x1   :  { %v2440_v0 = vld [vmem:[%s3683_s2] sm:$0xff]   ;;  %v2441_v1 = vld [vmem:[%s3683_s2 + $0x8] sm:$0xff]   ;;  %v2442_v2 = vld [vmem:[%s3683_s2 + $0x10] sm:$0xff]  }
   0x2   :  { %2221 = vmatprep.subr.bf16.mxu1 %v2440_v0  ;;  %v31_v3 = vld [vmem:[%s3681_s0] sm:$0xff]  ;;  %v32_v4 = vld [vmem:[%s3681_s0 + $0x8] sm:$0xff]  ;;  %v2443_v7 = vld [vmem:[%s3683_s2 + $0x18] sm:$0xff]  }
   0x3   :  { %2222 = vmatpush3.bf16.msra.mxu1 %v2440_v0  ;;  %v2587_v5 = vpack.c.bf16 %v32_v4, %v31_v3  ;;  %v2444_v6 = vld [vmem:[%s3682_s1] sm:$0xff]   ;;  %v2445_v8 = vld [vmem:[%s3682_s1 + $0x8] sm:$0xff]   ;;  %v33_v9 = vld [vmem:[%s3681_s0 + $0x10] sm:$0xff] }
   0x4   :  { %2223 = vmatprep.subr.bf16.mxu1 %v2441_v1  ;;  %2181 = vmatprep.subr.bf16.mxu0 %v2444_v6  ;;  %v2446_v10 = vld [vmem:[%s3682_s1 + $0x10] sm:$0xff]   ;;  %v34_v11 = vld [vmem:[%s3681_s0 + $0x18] sm:$0xff]  ;;  %v35_v12 = vld [vmem:[%s3681_s0 + $0x20] sm:$0xff] }
   0x5   :  { %2229 = vmatprep.mubr.msk.bf16.mxu1 %vm111_vm0, %v2587_v5  ;;  %2182 = vmatpush3.bf16.msra.mxu0 %v2444_v6  ;;  %v36_v13 = vld [vmem:[%s3681_s0 + $0x28] sm:$0xff]  ;;  %v2617_v14 = vpack.c.bf16 %v34_v11, %v33_v9  ;;  %v2447_v15 = vld [vmem:[%s3682_s1 + $0x18] sm:$0xff]   ;;  %v37_v17 = vld [vmem:[%s3681_s0 + $0x30] sm:$0xff] }
   0x6   :  { %2189 = vmatprep.mubr.msk.bf16.mxu0 %vm111_vm0, %v2587_v5  ;;  %2183 = vmatprep.subr.bf16.mxu0 %v2445_v8  ;;  %v2622_v16 = vpack.c.bf16 %v36_v13, %v35_v12  ;;  %v38_v18 = vld [vmem:[%s3681_s0 + $0x38] sm:$0xff]  ;;  %v39_v19 = vld [vmem:[%s3681_s0 + $0x40] sm:$0xff]  ;;  %v40_v20 = vld [vmem:[%s3681_s0 + $0x48] sm:$0xff] }
   0x7   :  { %2224 = vmatpush3.bf16.msra.mxu1 %v2441_v1  ;;  %v2640_v21 = vpack.c.bf16 %v38_v18, %v37_v17  ;;  %v2642_v22 = vpack.c.bf16 %v40_v20, %v39_v19 }
   0x8   :  { %2225 = vmatprep.subr.bf16.mxu1 %v2442_v2 }
   0x9   :  { %2184 = vmatpush3.bf16.msra.mxu0 %v2445_v8 }
   0xa   :  { %2185 = vmatprep.subr.bf16.mxu0 %v2446_v10 }
   0xb   :  { %2226 = vmatpush3.bf16.msra.mxu1 %v2442_v2 }
   0xc   :  { %2227 = vmatprep.subr.bf16.mxu1 %v2443_v7 }
   0xd   :  { %2186 = vmatpush3.bf16.msra.mxu0 %v2446_v10 }
   0xe   :  { %2187 = vmatprep.subr.bf16.mxu0 %v2447_v15 }
   0xf   :  { %2228 = vmatpush3.bf16.msra.mxu1 %v2443_v7 }
  0x11   :  { %2188 = vmatpush3.bf16.msra.mxu0 %v2447_v15 }
  0x12   :  { %2230 = vmatmul.mubr.msk.bf16.vlgmr.msra.gmra.mrb[0].mxu1 %vm111_vm0, %v2617_v14 }
  0x13   :  { %2233 = vmatprep.mubr.msk.bf16.mxu1 %vm111_vm0, %v2622_v16 }
  0x14   :  { %2190 = vmatmul.mubr.msk.bf16.vlgmr.msra.gmra.mrb[0].mxu0 %vm111_vm0, %v2617_v14 }
  0x15   :  { %13 = vsyncpa [#allocation3], 0  ;;  %2193 = vmatprep.mubr.msk.bf16.mxu0 %vm111_vm0, %v2622_v16  ;;  %v41_v23 = vld [vmem:[%s3681_s0 + $0x50] sm:$0xff]  ;;  %v42_v24 = vld [vmem:[%s3681_s0 + $0x58] sm:$0xff] }
  0x16   :  { %v43_v25 = vld [vmem:[%s3681_s0 + $0x60] sm:$0xff]  ;;  %v44_v26 = vld [vmem:[%s3681_s0 + $0x68] sm:$0xff]  ;;  %v2664_v27 = vpack.c.bf16 %v42_v24, %v41_v23  ;;  %v45_v29 = vld [vmem:[%s3681_s0 + $0x70] sm:$0xff] }
  0x17   :  { %v2666_v28 = vpack.c.bf16 %v44_v26, %v43_v25  ;;  %v46_v30 = vld [vmem:[%s3681_s0 + $0x78] sm:$0xff]  ;;  %v47_v31 = vld [vmem:[%s3681_s0 + $0x80] sm:$0xff]  ;;  %v48_v32 = vld [vmem:[%s3681_s0 + $0x88] sm:$0xff] }
  0x18   :  { %v2688_v33 = vpack.c.bf16 %v46_v30, %v45_v29  ;;  %v2690_v34 = vpack.c.bf16 %v48_v32, %v47_v31  ;;  %v49_v35 = vld [vmem:[%s3681_s0 + $0x90] sm:$0xff]  ;;  %v50_v36 = vld [vmem:[%s3681_s0 + $0x98] sm:$0xff]  ;;  %v51_v37 = vld [vmem:[%s3681_s0 + $0xa0] sm:$0xff] }
  0x19   :  { %v52_v38 = vld [vmem:[%s3681_s0 + $0xa8] sm:$0xff]  ;;  %v2712_v39 = vpack.c.bf16 %v50_v36, %v49_v35  ;;  %v53_v41 = vld [vmem:[%s3681_s0 + $0xb0] sm:$0xff]  ;;  %v54_v42 = vld [vmem:[%s3681_s0 + $0xb8] sm:$0xff] }
  0x1a   :  { %2234 = vmatmul.mubr.msk.bf16.gmra.mrb[4].mxu1 %vm111_vm0, %v2640_v21  ;;  %v2714_v40 = vpack.c.bf16 %v52_v38, %v51_v37  ;;  %v55_v43 = vld [vmem:[%s3681_s0 + $0xc0] sm:$0xff]  ;;  %v56_v44 = vld [vmem:[%s3681_s0 + $0xc8] sm:$0xff]  ;;  %v2736_v45 = vpack.c.bf16 %v54_v42, %v53_v41  ;;  %v57_v47 = vld [vmem:[%s3681_s0 + $0xd0] sm:$0xff] }
  0x1b   :  { %2237 = vmatprep.mubr.msk.bf16.mxu1 %vm111_vm0, %v2642_v22  ;;  %v2738_v46 = vpack.c.bf16 %v56_v44, %v55_v43  ;;  %v58_v48 = vld [vmem:[%s3681_s0 + $0xd8] sm:$0xff]  ;;  %v59_v49 = vld [vmem:[%s3681_s0 + $0xe0] sm:$0xff]  ;;  %v60_v50 = vld [vmem:[%s3681_s0 + $0xe8] sm:$0xff] }
  0x1c   :  { %2194 = vmatmul.mubr.msk.bf16.gmra.mrb[4].mxu0 %vm111_vm0, %v2640_v21  ;;  %v2760_v51 = vpack.c.bf16 %v58_v48, %v57_v47  ;;  %v2762_v52 = vpack.c.bf16 %v60_v50, %v59_v49  ;;  %v61_v53 = vld [vmem:[%s3681_s0 + $0xf0] sm:$0xff]  ;;  %v62_v54 = vld [vmem:[%s3681_s0 + $0xf8] sm:$0xff]  ;;  %v2448_v56 = vld [vmem:[%s3684_s3] sm:$0xff]  }
  0x1d   :  { %2197 = vmatprep.mubr.msk.bf16.mxu0 %vm111_vm0, %v2642_v22  ;;  %v2778_v55 = vpack.c.bf16 %v62_v54, %v61_v53  ;;  %v2449_v57 = vld [vmem:[%s3684_s3 + $0x8] sm:$0xff]   ;;  %2261 = vmatprep.subr.bf16.mxu0 %v2448_v56  ;;  %v2450_v58 = vld [vmem:[%s3684_s3 + $0x10] sm:$0xff]   ;;  %v2451_v59 = vld [vmem:[%s3684_s3 + $0x18] sm:$0xff]  }
  0x1e   :  { %2262 = vmatpush3.bf16.msra.mxu0 %v2448_v56 }
  0x1f   :  { %2263 = vmatprep.subr.bf16.mxu0 %v2449_v57 }
  0x22   :  { %2238 = vmatmul.mubr.msk.bf16.gmra.mrb[8].mxu1 %vm111_vm0, %v2664_v27  ;;  %2264 = vmatpush3.bf16.msra.mxu0 %v2449_v57 }
  0x23   :  { %2241 = vmatprep.mubr.msk.bf16.mxu1 %vm111_vm0, %v2666_v28  ;;  %2265 = vmatprep.subr.bf16.mxu0 %v2450_v58 }
  0x24   :  { %2198 = vmatmul.mubr.msk.bf16.gmra.mrb[8].mxu0 %vm111_vm0, %v2664_v27 }
  0x25   :  { %2201 = vmatprep.mubr.msk.bf16.mxu0 %vm111_vm0, %v2666_v28 }
  0x26   :  { %2266 = vmatpush3.bf16.msra.mxu0 %v2450_v58 }
  0x27   :  { %2267 = vmatprep.subr.bf16.mxu0 %v2451_v59 }
  0x2a   :  { %2242 = vmatmul.mubr.msk.bf16.gmra.mrb[12].mxu1 %vm111_vm0, %v2688_v33  ;;  %2268 = vmatpush3.bf16.msra.mxu0 %v2451_v59 }
  0x2b   :  { %2245 = vmatprep.mubr.msk.bf16.mxu1 %vm111_vm0, %v2690_v34 }
  0x2c   :  { %2202 = vmatmul.mubr.msk.bf16.gmra.mrb[12].mxu0 %vm111_vm0, %v2688_v33 }
  0x2d   :  { %2205 = vmatprep.mubr.msk.bf16.mxu0 %vm111_vm0, %v2690_v34 }
  0x32   :  { %2246 = vmatmul.mubr.msk.bf16.gmra.mrb[16].mxu1 %vm111_vm0, %v2712_v39 }
  0x33   :  { %2249 = vmatprep.mubr.msk.bf16.mxu1 %vm111_vm0, %v2714_v40 }
  0x34   :  { %2206 = vmatmul.mubr.msk.bf16.gmra.mrb[16].mxu0 %vm111_vm0, %v2712_v39 }
  0x35   :  { %2209 = vmatprep.mubr.msk.bf16.mxu0 %vm111_vm0, %v2714_v40 }
  0x3a   :  { %2250 = vmatmul.mubr.msk.bf16.gmra.mrb[20].mxu1 %vm111_vm0, %v2736_v45 }
  0x3b   :  { %2253 = vmatprep.mubr.msk.bf16.mxu1 %vm111_vm0, %v2738_v46 }
  0x3c   :  { %2210 = vmatmul.mubr.msk.bf16.gmra.mrb[20].mxu0 %vm111_vm0, %v2736_v45 }
  0x3d   :  { %2213 = vmatprep.mubr.msk.bf16.mxu0 %vm111_vm0, %v2738_v46 }
  0x42   :  { %2254 = vmatmul.mubr.msk.bf16.gmra.mrb[24].mxu1 %vm111_vm0, %v2760_v51 }
  0x43   :  { %2257 = vmatprep.mubr.msk.bf16.mxu1 %vm111_vm0, %v2762_v52 }
  0x44   :  { %2214 = vmatmul.mubr.msk.bf16.gmra.mrb[24].mxu0 %vm111_vm0, %v2760_v51 }
  0x45   :  { %2217 = vmatprep.mubr.msk.bf16.mxu0 %vm111_vm0, %v2762_v52 }
  0x4a   :  { %2258 = vmatmul.mubr.msk.bf16.gmra.mrb[28].mxu1 %vm111_vm0, %v2778_v55 }
  0x4c   :  { %2218 = vmatmul.mubr.msk.bf16.gmra.mrb[28].mxu0 %vm111_vm0, %v2778_v55 }
  0x4d   :  { %2269 = vmatprep.mubr.msk.bf16.mxu0 %vm111_vm0, %v2587_v5 }
  0x54   :  { %2270 = vmatmul.mubr.msk.bf16.vlgmr.msra.gmra.mrb[32].mxu0 %vm111_vm0, %v2617_v14 }
  0x55   :  { %2273 = vmatprep.mubr.msk.bf16.mxu0 %vm111_vm0, %v2622_v16 }
  0x5c   :  { %2274 = vmatmul.mubr.msk.bf16.gmra.mrb[36].mxu0 %vm111_vm0, %v2640_v21 }
  0x5d   :  { %2277 = vmatprep.mubr.msk.bf16.mxu0 %vm111_vm0, %v2642_v22 }
  0x64   :  { %2278 = vmatmul.mubr.msk.bf16.gmra.mrb[40].mxu0 %vm111_vm0, %v2664_v27 }
  0x65   :  { %2281 = vmatprep.mubr.msk.bf16.mxu0 %vm111_vm0, %v2666_v28 }
  0x6c   :  { %2282 = vmatmul.mubr.msk.bf16.gmra.mrb[44].mxu0 %vm111_vm0, %v2688_v33 }
  0x6d   :  { %2285 = vmatprep.mubr.msk.bf16.mxu0 %vm111_vm0, %v2690_v34 }
  0x74   :  { %2286 = vmatmul.mubr.msk.bf16.gmra.mrb[48].mxu0 %vm111_vm0, %v2712_v39 }
  0x75   :  { %2289 = vmatprep.mubr.msk.bf16.mxu0 %vm111_vm0, %v2714_v40 }
  0x7c   :  { %2290 = vmatmul.mubr.msk.bf16.gmra.mrb[52].mxu0 %vm111_vm0, %v2736_v45 }
  0x7d   :  { %2293 = vmatprep.mubr.msk.bf16.mxu0 %vm111_vm0, %v2738_v46 }
  0x84   :  { %2294 = vmatmul.mubr.msk.bf16.gmra.mrb[56].mxu0 %vm111_vm0, %v2760_v51 }
  0x85   :  { %2297 = vmatprep.mubr.msk.bf16.mxu0 %vm111_vm0, %v2762_v52 }
  0x8c   :  { %2298 = vmatmul.mubr.msk.bf16.gmra.mrb[60].mxu0 %vm111_vm0, %v2778_v55 }
  0xe5   :  { %v2810_v60 = vpop.f32.mrb[0].mxu1 }
  0xe6   :  { %v2812_v61 = vpop.f32.mrb[1].mxu1  ;;  %v819_v1 = vmul.f32 %v2810_v60, %v2810_v60 }
  0xe7   :  { %v817_v62 = vmul.f32 %v2812_v61, %v2812_v61  ;;  %v2816_v63 = vpop.f32.mrb[2].mxu1  ;;  %v2832_v6 = vpop.f32.mrb[0].mxu0 }
  0xe8   :  { %v2820_v0 = vpop.f32.mrb[3].mxu1  ;;  %v820_v3 = vmul.f32 %v2816_v63, %v2816_v63  ;;  %v2834_v8 = vpop.f32.mrb[1].mxu0  ;;  %v852_v9 = vsel %vm111_vm0, %v819_v1, 0.0  ;;  %v709_v11 = vmul.f32 %v2832_v6, %v2832_v6 }
  0xe9   :  { %v818_v2 = vmul.f32 %v2820_v0, %v2820_v0  ;;  %v849_v4 = vsel %vm111_vm0, %v817_v62, 0.0  ;;  %v707_v12 = vmul.f32 %v2834_v8, %v2834_v8  ;;  %v2843_v13 = vpop.f32.mrb[2].mxu0 }
  0xea   :  { %v854_v14 = vsel %vm111_vm0, %v820_v3, 0.0  ;;  %v2848_v17 = vpop.f32.mrb[3].mxu0  ;;  %v710_v21 = vmul.f32 %v2843_v13, %v2843_v13  ;;  %v742_v28 = vsel %vm111_vm0, %v709_v11, 0.0 }
  0xeb   :  { %v850_v5 = vsel %vm111_vm0, %v818_v2, 0.0  ;;  %v739_v20 = vsel %vm111_vm0, %v707_v12, 0.0  ;;  %v708_v22 = vmul.f32 %v2848_v17, %v2848_v17 }
  0xec   :  { %v851_v7 = vadd.f32 %v850_v5, %v849_v4  ;;  %v744_v35 = vsel %vm111_vm0, %v710_v21, 0.0 }
  0xed   :  { %v2837_v10 = vpop.f32.mrb[4].mxu1  ;;  %v740_v29 = vsel %vm111_vm0, %v708_v22, 0.0 }
  0xee   :  { %v853_v15 = vadd.f32 %v852_v9, %v851_v7  ;;  %v2846_v16 = vpop.f32.mrb[5].mxu1  ;;  %v823_v23 = vmul.f32 %v2837_v10, %v2837_v10  ;;  %v741_v32 = vadd.f32 %v740_v29, %v739_v20 }
  0xef   :  { %v821_v18 = vmul.f32 %v2846_v16, %v2846_v16  ;;  %v2852_v19 = vpop.f32.mrb[6].mxu1  ;;  %v2876_v36 = vpop.f32.mrb[4].mxu0 }
  0xf0   :  { %v855_v24 = vadd.f32 %v854_v14, %v853_v15  ;;  %v2863_v25 = vpop.f32.mrb[7].mxu1  ;;  %v824_v31 = vmul.f32 %v2852_v19, %v2852_v19  ;;  %v743_v37 = vadd.f32 %v742_v28, %v741_v32  ;;  %v2878_v38 = vpop.f32.mrb[5].mxu0  ;;  %v860_v41 = vsel %vm111_vm0, %v823_v23, 0.0 }
  0xf1   :  { %v856_v26 = vsel %vm111_vm0, %v821_v18, 0.0  ;;  %v822_v27 = vmul.f32 %v2863_v25, %v2863_v25  ;;  %v713_v43 = vmul.f32 %v2876_v36, %v2876_v36  ;;  %v711_v44 = vmul.f32 %v2878_v38, %v2878_v38  ;;  %v2887_v47 = vpop.f32.mrb[6].mxu0 }
  0xf2   :  { %v857_v30 = vadd.f32 %v856_v26, %v855_v24  ;;  %v862_v48 = vsel %vm111_vm0, %v824_v31, 0.0  ;;  %v745_v53 = vadd.f32 %v744_v35, %v743_v37  ;;  %v2892_v54 = vpop.f32.mrb[7].mxu0  ;;  %v714_v59 = vmul.f32 %v2887_v47, %v2887_v47 }
  0xf3   :  { %v858_v33 = vsel %vm111_vm0, %v822_v27, 0.0  ;;  %v746_v58 = vsel %vm111_vm0, %v711_v44, 0.0  ;;  %v712_v62 = vmul.f32 %v2892_v54, %v2892_v54  ;;  %v750_v9 = vsel %vm111_vm0, %v713_v43, 0.0 }
  0xf4   :  { %v859_v34 = vadd.f32 %v858_v33, %v857_v30  ;;  %v747_v4 = vadd.f32 %v746_v58, %v745_v53  ;;  %v752_v18 = vsel %vm111_vm0, %v714_v59, 0.0 }
  0xf5   :  { %v2881_v42 = vpop.f32.mrb[8].mxu1  ;;  %v748_v11 = vsel %vm111_vm0, %v712_v62, 0.0 }
  0xf6   :  { %v861_v49 = vadd.f32 %v860_v41, %v859_v34  ;;  %v2890_v50 = vpop.f32.mrb[9].mxu1  ;;  %v827_v1 = vmul.f32 %v2881_v42, %v2881_v42  ;;  %v749_v14 = vadd.f32 %v748_v11, %v747_v4 }
  0xf7   :  { %v825_v56 = vmul.f32 %v2890_v50, %v2890_v50  ;;  %v2896_v57 = vpop.f32.mrb[10].mxu1  ;;  %v2920_v20 = vpop.f32.mrb[8].mxu0 }
  0xf8   :  { %v863_v2 = vadd.f32 %v862_v48, %v861_v49  ;;  %v2907_v3 = vpop.f32.mrb[11].mxu1  ;;  %v828_v12 = vmul.f32 %v2896_v57, %v2896_v57  ;;  %v751_v21 = vadd.f32 %v750_v9, %v749_v14  ;;  %v2922_v22 = vpop.f32.mrb[9].mxu0  ;;  %v868_v23 = vsel %vm111_vm0, %v827_v1, 0.0 }
  0xf9   :  { %v864_v5 = vsel %vm111_vm0, %v825_v56, 0.0  ;;  %v826_v7 = vmul.f32 %v2907_v3, %v2907_v3  ;;  %v717_v26 = vmul.f32 %v2920_v20, %v2920_v20  ;;  %v715_v27 = vmul.f32 %v2922_v22, %v2922_v22  ;;  %v2931_v28 = vpop.f32.mrb[10].mxu0 }
  0xfa   :  { %v865_v39 = vadd.f32 %v864_v5, %v863_v2  ;;  %v870_v29 = vsel %vm111_vm0, %v828_v12, 0.0  ;;  %v753_v32 = vadd.f32 %v752_v18, %v751_v21  ;;  %v2936_v33 = vpop.f32.mrb[11].mxu0  ;;  %v718_v41 = vmul.f32 %v2931_v28, %v2931_v28 }
  0xfb   :  { %v866_v15 = vsel %vm111_vm0, %v826_v7, 0.0  ;;  %v754_v37 = vsel %vm111_vm0, %v715_v27, 0.0  ;;  %v716_v43 = vmul.f32 %v2936_v33, %v2936_v33  ;;  %v758_v59 = vsel %vm111_vm0, %v717_v26, 0.0 }
  0xfc   :  { %v867_v40 = vadd.f32 %v866_v15, %v865_v39  ;;  %v755_v53 = vadd.f32 %v754_v37, %v753_v32  ;;  %v760_v5 = vsel %vm111_vm0, %v718_v41, 0.0 }
  0xfd   :  { %v2925_v24 = vpop.f32.mrb[12].mxu1  ;;  %v756_v62 = vsel %vm111_vm0, %v716_v43, 0.0 }
  0xfe   :  { %v869_v30 = vadd.f32 %v868_v23, %v867_v40  ;;  %v2934_v31 = vpop.f32.mrb[13].mxu1  ;;  %v831_v44 = vmul.f32 %v2925_v24, %v2925_v24  ;;  %v757_v2 = vadd.f32 %v756_v62, %v755_v53 }
  0xff   :  { %v829_v35 = vmul.f32 %v2934_v31, %v2934_v31  ;;  %v2940_v34 = vpop.f32.mrb[14].mxu1  ;;  %v2964_v7 = vpop.f32.mrb[12].mxu0 }
 0x100   :  { %v871_v48 = vadd.f32 %v870_v29, %v869_v30  ;;  %v2951_v49 = vpop.f32.mrb[15].mxu1  ;;  %v832_v1 = vmul.f32 %v2940_v34, %v2940_v34  ;;  %v759_v9 = vadd.f32 %v758_v59, %v757_v2  ;;  %v2966_v11 = vpop.f32.mrb[13].mxu0  ;;  %v876_v39 = vsel %vm111_vm0, %v831_v44, 0.0 }
 0x101   :  { %v872_v56 = vsel %vm111_vm0, %v829_v35, 0.0  ;;  %v830_v58 = vmul.f32 %v2951_v49, %v2951_v49  ;;  %v721_v14 = vmul.f32 %v2964_v7, %v2964_v7  ;;  %v719_v15 = vmul.f32 %v2966_v11, %v2966_v11  ;;  %v2975_v18 = vpop.f32.mrb[14].mxu0 }
 0x102   :  { %v873_v45 = vadd.f32 %v872_v56, %v871_v48  ;;  %v878_v40 = vsel %vm111_vm0, %v832_v1, 0.0  ;;  %v761_v26 = vadd.f32 %v760_v5, %v759_v9  ;;  %v2980_v27 = vpop.f32.mrb[15].mxu0  ;;  %v722_v35 = vmul.f32 %v2975_v18, %v2975_v18 }
 0x103   :  { %v874_v4 = vsel %vm111_vm0, %v830_v58, 0.0  ;;  %v762_v32 = vsel %vm111_vm0, %v719_v15, 0.0  ;;  %v720_v37 = vmul.f32 %v2980_v27, %v2980_v27  ;;  %v766_v56 = vsel %vm111_vm0, %v721_v14, 0.0 }
 0x104   :  { %v875_v46 = vadd.f32 %v874_v4, %v873_v45  ;;  %v763_v44 = vadd.f32 %v762_v32, %v761_v26  ;;  %v768_v52 = vsel %vm111_vm0, %v722_v35, 0.0 }
 0x105   :  { %v2969_v12 = vpop.f32.mrb[16].mxu1  ;;  %v764_v58 = vsel %vm111_vm0, %v720_v37, 0.0  ;;  %v978_v37 = vlaneseq }
 0x106   :  { %v877_v21 = vadd.f32 %v876_v39, %v875_v46  ;;  %v2978_v23 = vpop.f32.mrb[17].mxu1  ;;  %v835_v48 = vmul.f32 %v2969_v12, %v2969_v12  ;;  %v765_v62 = vadd.f32 %v764_v58, %v763_v44 }
 0x107   :  { %v833_v29 = vmul.f32 %v2978_v23, %v2978_v23  ;;  %v2984_v30 = vpop.f32.mrb[18].mxu1  ;;  %v3008_v2 = vpop.f32.mrb[16].mxu0 }
 0x108   :  { %v879_v41 = vadd.f32 %v878_v40, %v877_v21  ;;  %v2993_v43 = vpop.f32.mrb[19].mxu1  ;;  %v836_v45 = vmul.f32 %v2984_v30, %v2984_v30  ;;  %3711 = vst [vmem:[#allocation5_spill] sm:$0xff] %v3008_v2  ;;  %v767_v46 = vadd.f32 %v766_v56, %v765_v62  ;;  %v3010_v9 = vpop.f32.mrb[17].mxu0  ;;  %v889_v39 = vsel %vm111_vm0, %v835_v48, 0.0 }
 0x109   :  { %v834_v53 = vmul.f32 %v2993_v43, %v2993_v43  ;;  %v886_v51 = vsel %vm111_vm0, %v833_v29, 0.0  ;;  %3712 = vst [vmem:[#allocation6_spill] sm:$0xff] %v3010_v9  ;;  %v723_v15 = vmul.f32 %v3010_v9, %v3010_v9  ;;  %v3017_v40 = vpop.f32.mrb[18].mxu0 }
 0x10a   :  { %v880_v59 = vrot.slane %v879_v41, 4  ;;  %3714 = vst [vmem:[#allocation8_spill] sm:$0xff] %v3017_v40  ;;  %v769_v32 = vadd.f32 %v768_v52, %v767_v46  ;;  %v3021_v35 = vpop.f32.mrb[19].mxu0 }
 0x10b   :  { %v887_v1 = vsel %vm111_vm0, %v834_v53, 0.0  ;;  %3715 = vst [vmem:[#allocation9_spill] sm:$0xff] %v3021_v35  ;;  %v725_v53 = vmul.f32 %v3008_v2, %v3008_v2 }
 0x10c   :  { %v881_v4 = vadd.f32 %v880_v59, %v879_v41  ;;  %v888_v5 = vadd.f32 %v887_v1, %v886_v51  ;;  %v891_v41 = vsel %vm111_vm0, %v836_v45, 0.0  ;;  %v776_v51 = vsel %vm111_vm0, %v723_v15, 0.0 }
 0x10d   :  { %v3013_v14 = vpop.f32.mrb[20].mxu1  ;;  %v770_v52 = vrot.slane %v769_v32, 4  ;;  %v779_v9 = vsel %vm111_vm0, %v725_v53, 0.0 }
 0x10e   :  { %3713 = vst [vmem:[#allocation7_spill] sm:$0xff] %v3013_v14  ;;  %v882_v21 = vrot.slane %v881_v4, 2  ;;  %v890_v26 = vadd.f32 %v889_v39, %v888_v5  ;;  %v3019_v29 = vpop.f32.mrb[21].mxu1  ;;  %v839_v58 = vmul.f32 %v3013_v14, %v3013_v14  ;;  %v726_v5 = vmul.f32 %v3017_v40, %v3017_v40 }
 0x10f   :  { %v837_v44 = vmul.f32 %v3019_v29, %v3019_v29  ;;  %v3026_v48 = vpop.f32.mrb[22].mxu1  ;;  %v724_v39 = vmul.f32 %v3021_v35, %v3021_v35 }
 0x110   :  { %3716 = vst [vmem:[#allocation10_spill] sm:$0xff] %v3026_v48  ;;  %v883_v56 = vadd.f32 %v882_v21, %v881_v4  ;;  %v892_v59 = vadd.f32 %v891_v41, %v890_v26  ;;  %v3034_v62 = vpop.f32.mrb[23].mxu1  ;;  %v840_v4 = vmul.f32 %v3026_v48, %v3026_v48  ;;  %v3046_v21 = vshrl.u32 %v978_v37, 7  ;;  %v3049_v41 = vpop.f32.mrb[20].mxu0 }
 0x111   :  { %v893_v45 = vsel %vm111_vm0, %v837_v44, 0.0  ;;  %v838_v1 = vmul.f32 %v3034_v62, %v3034_v62  ;;  %v771_v26 = vadd.f32 %v770_v52, %v769_v32  ;;  %3717 = vst [vmem:[#allocation11_spill] sm:$0xff] %v3049_v41  ;;  %v777_v40 = vsel %vm111_vm0, %v724_v39, 0.0 }
 0x112   :  { %v884_v46 = vrot.slane %v883_v56, 1  ;;  %v894_v55 = vadd.f32 %v893_v45, %v892_v59  ;;  %v3053_v59 = vpop.f32.mrb[21].mxu0  ;;  %v897_v45 = vsel %vm111_vm0, %v839_v58, 0.0  ;;  %v778_v37 = vadd.f32 %v777_v40, %v776_v51 }
 0x113   :  { %v895_v15 = vsel %vm111_vm0, %v838_v1, 0.0  ;;  %3718 = vst [vmem:[#allocation12_spill] sm:$0xff] %v3053_v59  ;;  %v772_v35 = vrot.slane %v771_v26, 2  ;;  %v727_v1 = vmul.f32 %v3053_v59, %v3053_v59  ;;  %v3060_v32 = vpop.f32.mrb[22].mxu0  ;;  %v729_v59 = vmul.f32 %v3049_v41, %v3049_v41 }
 0x114   :  { %v885_v44 = vadd.f32 %v884_v46, %v883_v56  ;;  %v896_v2 = vadd.f32 %v895_v15, %v894_v55  ;;  %3720 = vst [vmem:[#allocation14_spill] sm:$0xff] %v3060_v32  ;;  %v899_v56 = vsel %vm111_vm0, %v840_v4, 0.0  ;;  %v781_v55 = vsel %vm111_vm0, %v726_v5, 0.0  ;;  %v3066_v39 = vpop.f32.mrb[23].mxu0 }
 0x115   :  { %v3056_v48 = vpop.f32.mrb[24].mxu1  ;;  %3721 = vst [vmem:[#allocation15_spill] sm:$0xff] %v3066_v39  ;;  %v773_v15 = vadd.f32 %v772_v35, %v771_v26  ;;  %v780_v51 = vadd.f32 %v779_v9, %v778_v37  ;;  %v783_v5 = vsel %vm111_vm0, %v727_v1, 0.0 }
 0x116   :  { %3719 = vst [vmem:[#allocation13_spill] sm:$0xff] %v3056_v48  ;;  %v923_v52 = vmax.f32 %v885_v44, 1e-24  ;;  %v898_v46 = vadd.f32 %v897_v45, %v896_v2  ;;  %v3063_v53 = vpop.f32.mrb[25].mxu1  ;;  %v843_v2 = vmul.f32 %v3056_v48, %v3056_v48 }
 0x117   :  { %v841_v58 = vmul.f32 %v3063_v53, %v3063_v53  ;;  %v3070_v40 = vpop.f32.mrb[26].mxu1  ;;  %v774_v14 = vrot.slane %v773_v15, 1  ;;  %v782_v26 = vadd.f32 %v781_v55, %v780_v51 }
 0x118   :  { %3722 = vst [vmem:[#allocation16_spill] sm:$0xff] %v3070_v40  ;;  %2456 = vrsqrt.f32 %v923_v52  ;;  %v900_v4 = vadd.f32 %v899_v56, %v898_v46  ;;  %v3076_v44 = vpop.f32.mrb[27].mxu1  ;;  %v844_v37 = vmul.f32 %v3070_v40, %v3070_v40  ;;  %v730_v52 = vmul.f32 %v3060_v32, %v3060_v32 }
 0x119   :  { %3723 = vst [vmem:[#allocation17_spill] sm:$0xff] %v3076_v44  ;;  %v901_v45 = vsel %vm111_vm0, %v841_v58, 0.0  ;;  %v842_v35 = vmul.f32 %v3076_v44, %v3076_v44  ;;  %v728_v56 = vmul.f32 %v3066_v39, %v3066_v39  ;;  %v775_v46 = vadd.f32 %v774_v14, %v773_v15  ;;  %v3089_v58 = vpop.f32.mrb[24].mxu0 }
 0x11a   :  { %v902_v9 = vadd.f32 %v901_v45, %v900_v4  ;;  %v784_v41 = vadd.f32 %v783_v5, %v782_v26  ;;  %3724 = vst [vmem:[#allocation18_spill] sm:$0xff] %v3089_v58  ;;  %v787_v44 = vsel %vm111_vm0, %v729_v59, 0.0  ;;  %v3093_v51 = vpop.f32.mrb[25].mxu0  ;;  %v905_v4 = vsel %vm111_vm0, %v843_v2, 0.0 }
 0x11b   :  { %v903_v1 = vsel %vm111_vm0, %v842_v35, 0.0  ;;  %v785_v55 = vsel %vm111_vm0, %v728_v56, 0.0  ;;  %3725 = vst [vmem:[#allocation19_spill] sm:$0xff] %v3093_v51  ;;  %v813_v45 = vmax.f32 %v775_v46, 1e-24  ;;  %v731_v14 = vmul.f32 %v3093_v51, %v3093_v51  ;;  %v3100_v15 = vpop.f32.mrb[26].mxu0 }
 0x11c   :  { %v904_v48 = vadd.f32 %v903_v1, %v902_v9  ;;  %v786_v40 = vadd.f32 %v785_v55, %v784_v41  ;;  %3727 = vst [vmem:[#allocation21_spill] sm:$0xff] %v3100_v15  ;;  %v907_v35 = vsel %vm111_vm0, %v844_v37, 0.0  ;;  %v789_v9 = vsel %vm111_vm0, %v730_v52, 0.0  ;;  %v3107_v56 = vpop.f32.mrb[27].mxu0 }
 0x11d   :  { %v3096_v32 = vpop.f32.mrb[28].mxu1  ;;  %3728 = vst [vmem:[#allocation22_spill] sm:$0xff] %v3107_v56  ;;  %2458 = vrsqrt.f32 %v813_v45  ;;  %v733_v1 = vmul.f32 %v3089_v58, %v3089_v58  ;;  %v734_v45 = vmul.f32 %v3100_v15, %v3100_v15  ;;  %v732_v58 = vmul.f32 %v3107_v56, %v3107_v56 }
 0x11e   :  { %3726 = vst [vmem:[#allocation20_spill] sm:$0xff] %v3096_v32  ;;  %v906_v59 = vadd.f32 %v905_v4, %v904_v48  ;;  %v3104_v26 = vpop.f32.mrb[29].mxu1  ;;  %v788_v46 = vadd.f32 %v787_v44, %v786_v40  ;;  %v3118_v48 = vld [vmem:[%s3687_s6] sm:$0x1]  ;;  %v847_v37 = vmul.f32 %v3096_v32, %v3096_v32  ;;  %v791_v4 = vsel %vm111_vm0, %v731_v14, 0.0 }
 0x11f   :  { %v845_v41 = vmul.f32 %v3104_v26, %v3104_v26  ;;  %v3111_v2 = vpop.f32.mrb[30].mxu1  ;;  %v793_v15 = vsel %vm111_vm0, %v732_v58, 0.0  ;;  %v3731_v56 = vsub.s32 0, %v3046_v21 }
 0x120   :  { %v908_v52 = vadd.f32 %v907_v35, %v906_v59  ;;  %v3122_v55 = vpop.f32.mrb[31].mxu1  ;;  %v790_v5 = vadd.f32 %v789_v9, %v788_v46  ;;  %v848_v35 = vmul.f32 %v3111_v2, %v3111_v2  ;;  %v795_v46 = vsel %vm111_vm0, %v733_v1, 0.0 }
 0x121   :  { %3729 = vst [vmem:[#allocation23_spill] sm:$0xff] %v3122_v55  ;;  %v909_v40 = vsel %vm111_vm0, %v845_v41, 0.0  ;;  %v846_v44 = vmul.f32 %v3122_v55, %v3122_v55  ;;  %v3137_v41 = vpop.f32.mrb[28].mxu0  ;;  %v913_v55 = vsel %vm111_vm0, %v847_v37, 0.0 }
 0x122   :  { %v2457_v51 = vpop.eup %2456  ;;  %v910_v39 = vadd.f32 %v909_v40, %v908_v52  ;;  %v792_v32 = vadd.f32 %v791_v4, %v790_v5  ;;  %3730 = vst [vmem:[#allocation24_spill] sm:$0xff] %v3137_v41  ;;  %v737_v52 = vmul.f32 %v3137_v41, %v3137_v41  ;;  %v3143_v40 = vpop.f32.mrb[29].mxu0  ;;  %v797_v5 = vsel %vm111_vm0, %v734_v45, 0.0 }
 0x123   :  { %v928_v59 = vmul.f32 %v2457_v51, %v3118_v48  ;;  %v911_v14 = vsel %vm111_vm0, %v846_v44, 0.0  ;;  %v735_v58 = vmul.f32 %v3143_v40, %v3143_v40  ;;  %v3152_v44 = vpop.f32.mrb[30].mxu0 }
 0x124   :  { %v912_v9 = vadd.f32 %v911_v14, %v910_v39  ;;  %v794_v4 = vadd.f32 %v793_v15, %v792_v32  ;;  %3732 = vst [vmem:[#allocation25_spill] sm:$0xff] %v3152_v44  ;;  %v915_v39 = vsel %vm111_vm0, %v848_v35, 0.0  ;;  %v803_v37 = vsel %vm111_vm0, %v737_v52, 0.0  ;;  %v3158_v41 = vpop.f32.mrb[31].mxu0 }
 0x125   :  { %v3147_v51 = vrot.slane %v928_v59, %v3731_v56  ;;  %v738_v14 = vmul.f32 %v3152_v44, %v3152_v44  ;;  %v799_v35 = vsel %vm111_vm0, %v735_v58, 0.0 }
 0x126   :  { %v914_v1 = vadd.f32 %v913_v55, %v912_v9  ;;  %v796_v15 = vadd.f32 %v795_v46, %v794_v4 }
 0x127   :  { %v986_v56 = vmul.f32 %v3147_v51, %v2812_v61  ;;  %v987_v32 = vmul.f32 %v3147_v51, %v2820_v0  ;;  %v988_v45 = vmul.f32 %v2810_v60, %v3147_v51  ;;  %v989_v55 = vmul.f32 %v2816_v63, %v3147_v51  ;;  %v2459_v52 = vpop.eup %2458 }
 0x128   :  { %v916_v59 = vadd.f32 %v915_v39, %v914_v1  ;;  %v805_v9 = vsel %vm111_vm0, %v738_v14, 0.0  ;;  %v798_v44 = vadd.f32 %v797_v5, %v796_v15  ;;  %v736_v61 = vmul.f32 %v3158_v41, %v3158_v41 }
 0x129   :  { %1018 = vxpose.xlu0.b32.start [1/16] (narrow) %v986_v56, 64  ;;  %v990_v0 = vmul.f32 %v3147_v51, %v2846_v16  ;;  %v3176_v60 = vmul.f32 %v3147_v51, %v2863_v25  ;;  %v942_v46 = vmul.f32 %v2459_v52, %v2966_v11  ;;  %v943_v63 = vmul.f32 %v2459_v52, %v2980_v27 }
 0x12a   :  { %v917_v4 = vrot.slane %v916_v59, 4  ;;  %v930_v58 = vmul.f32 %v2459_v52, %v2834_v8  ;;  %v800_v39 = vadd.f32 %v799_v35, %v798_v44  ;;  %v801_v5 = vsel %vm111_vm0, %v736_v61, 0.0 }
 0x12b   :  { %v931_v1 = vmul.f32 %v2459_v52, %v2848_v17  ;;  %v992_v14 = vmul.f32 %v2837_v10, %v3147_v51  ;;  %v3185_v16 = vpack.c.bf16 %v943_v63, %v942_v46  ;;  %v932_v25 = vmul.f32 %v2459_v52, %v2832_v6 }
 0x12c   :  { %v918_v56 = vadd.f32 %v917_v4, %v916_v59  ;;  %v933_v11 = vmul.f32 %v2459_v52, %v2843_v13  ;;  %v802_v27 = vadd.f32 %v801_v5, %v800_v39  ;;  %v993_v8 = vmul.f32 %v2852_v19, %v3147_v51 }
 0x12d   :  { %1019 = vxpose.xlu0.b32.cont [2/16] (narrow) %v987_v32, 64  ;;  %v962_v15 = vpack.c.bf16 %v931_v1, %v930_v58  ;;  %v934_v44 = vmul.f32 %v2459_v52, %v2878_v38  ;;  %v935_v61 = vmul.f32 %v2459_v52, %v2892_v54  ;;  %v3195_v10 = vmul.f32 %v3147_v51, %v2890_v50 }
 0x12e   :  { %v919_v35 = vrot.slane %v918_v56, 2  ;;  %v963_v17 = vpack.c.bf16 %v933_v11, %v932_v25  ;;  %v804_v59 = vadd.f32 %v803_v37, %v802_v27  ;;  %v936_v6 = vmul.f32 %v2459_v52, %v2876_v36  ;;  %v3734_v27 = vld [vmem:[#allocation7_spill] sm:$0xff] }
 0x12f   :  { %2301 = vmatprep.subr.bf16.mxu0 %v962_v15  ;;  %v937_v13 = vmul.f32 %v2459_v52, %v2887_v47  ;;  %v3201_v32 = vmul.f32 %v3147_v51, %v2907_v3  ;;  %v964_v38 = vpack.c.bf16 %v935_v61, %v934_v44  ;;  %v938_v46 = vmul.f32 %v2459_v52, %v2922_v22  ;;  %v3740_v61 = vld [vmem:[#allocation20_spill] sm:$0xff] }
 0x130   :  { %v920_v19 = vadd.f32 %v919_v35, %v918_v56  ;;  %2302 = vmatpush3.bf16.msra.mxu0 %v962_v15  ;;  %v939_v54 = vmul.f32 %v2459_v52, %v2936_v33  ;;  %v806_v50 = vadd.f32 %v805_v9, %v804_v59  ;;  %v3207_v36 = vmul.f32 %v2881_v42, %v3147_v51  ;;  %v3735_v15 = vld [vmem:[#allocation10_spill] sm:$0xff]  ;;  %v3739_v35 = vld [vmem:[#allocation23_spill] sm:$0xff] }
 0x131   :  { %1020 = vxpose.xlu0.b32.cont [3/16] (narrow) %v988_v45, 64  ;;  %2303 = vmatprep.subr.bf16.mxu0 %v963_v17  ;;  %v965_v37 = vpack.c.bf16 %v937_v13, %v936_v6  ;;  %v940_v3 = vmul.f32 %v2459_v52, %v2920_v20  ;;  %v941_v4 = vmul.f32 %v2459_v52, %v2931_v28 }
 0x132   :  { %v921_v47 = vrot.slane %v920_v19, 1  ;;  %v966_v63 = vpack.c.bf16 %v939_v54, %v938_v46  ;;  %v807_v58 = vrot.slane %v806_v50, 4  ;;  %v3213_v22 = vmul.f32 %v2896_v57, %v3147_v51  ;;  %v3742_v46 = vld [vmem:[#allocation9_spill] sm:$0xff] }
 0x133   :  { %v3217_v33 = vmul.f32 %v3147_v51, %v2934_v31  ;;  %v944_v45 = vmul.f32 %v2459_v52, %v2964_v7  ;;  %v967_v42 = vpack.c.bf16 %v941_v4, %v940_v3  ;;  %v945_v39 = vmul.f32 %v2459_v52, %v2975_v18 }
 0x134   :  { %v922_v9 = vadd.f32 %v921_v47, %v920_v19  ;;  %2304 = vmatpush3.bf16.msra.mxu0 %v963_v17  ;;  %v3223_v20 = vmul.f32 %v3147_v51, %v2951_v49  ;;  %v808_v28 = vadd.f32 %v807_v58, %v806_v50  ;;  %v3227_v57 = vmul.f32 %v2925_v24, %v3147_v51  ;;  %v3741_v19 = vld [vmem:[#allocation6_spill] sm:$0xff]  ;;  %v3746_v58 = vld [vmem:[#allocation15_spill] sm:$0xff] }
 0x135   :  { %1021 = vxpose.xlu0.b32.cont [4/16] (narrow) %v989_v55, 64  ;;  %2305 = vmatprep.subr.bf16.mxu0 %v964_v38  ;;  %v3231_v31 = vmul.f32 %v2940_v34, %v3147_v51  ;;  %v969_v5 = vpack.c.bf16 %v945_v39, %v944_v45  ;;  %v3733_v52 = vsub.s32 0, %v3046_v21  ;;  %v3747_v45 = vld [vmem:[#allocation11_spill] sm:$0xff] }
 0x136   :  { %v924_v7 = vmax.f32 %v922_v9, 1e-24  ;;  %v809_v1 = vrot.slane %v808_v28, 2 }
 0x138   :  { %2460 = vrsqrt.f32 %v924_v7  ;;  %2306 = vmatpush3.bf16.msra.mxu0 %v964_v38  ;;  %v810_v18 = vadd.f32 %v809_v1, %v808_v28  ;;  %v3749_v28 = vld [vmem:[#allocation19_spill] sm:$0xff] }
 0x139   :  { %1022 = vxpose.xlu0.b32.cont [5/16] (narrow) %v990_v0, 64  ;;  %2307 = vmatprep.subr.bf16.mxu0 %v965_v37 }
 0x13a   :  { %v811_v49 = vrot.slane %v810_v18, 1 }
 0x13c   :  { %2308 = vmatpush3.bf16.msra.mxu0 %v965_v37  ;;  %v812_v55 = vadd.f32 %v811_v49, %v810_v18  ;;  %v3744_v37 = vld [vmem:[#allocation8_spill] sm:$0xff]  ;;  %v3751_v18 = vld [vmem:[#allocation18_spill] sm:$0xff] }
 0x13d   :  { %1023 = vxpose.xlu0.b32.cont [6/16] (narrow) %v3176_v60, 64  ;;  %2309 = vmatprep.subr.bf16.mxu0 %v966_v63 }
 0x13e   :  { %v814_v24 = vmax.f32 %v812_v55, 1e-24  ;;  %v3752_v55 = vld [vmem:[#allocation21_spill] sm:$0xff] }
 0x140   :  { %2310 = vmatpush3.bf16.msra.mxu0 %v966_v63  ;;  %2462 = vrsqrt.f32 %v814_v24  ;;  %v3745_v63 = vld [vmem:[#allocation12_spill] sm:$0xff] }
 0x141   :  { %1024 = vxpose.xlu0.b32.cont [7/16] (narrow) %v992_v14, 64  ;;  %2311 = vmatprep.subr.bf16.mxu0 %v967_v42 }
 0x142   :  { %v2461_v34 = vpop.eup %2460 }
 0x143   :  { %v929_v51 = vmul.f32 %v2461_v34, %v3118_v48  ;;  %v3753_v34 = vld [vmem:[#allocation24_spill] sm:$0xff] }
 0x144   :  { %2312 = vmatpush3.bf16.msra.mxu0 %v967_v42  ;;  %v3748_v42 = vld [vmem:[#allocation14_spill] sm:$0xff] }
 0x145   :  { %v985_v56 = vrot.slane %v929_v51, %v3733_v52  ;;  %1025 = vxpose.xlu0.b32.cont [8/16] (narrow) %v993_v8, 64  ;;  %2313 = vmatprep.subr.bf16.mxu0 %v3185_v16 }
 0x147   :  { %v1002_v0 = vmul.f32 %v985_v56, %v2978_v23  ;;  %v1003_v60 = vmul.f32 %v985_v56, %v2993_v43  ;;  %v1004_v25 = vmul.f32 %v2969_v12, %v985_v56  ;;  %v1005_v11 = vmul.f32 %v2984_v30, %v985_v56  ;;  %v3736_v43 = vld [vmem:[#allocation17_spill] sm:$0xff] }
 0x148   :  { %2314 = vmatpush3.bf16.msra.mxu0 %v3185_v16  ;;  %v1006_v14 = vmul.f32 %v985_v56, %v3019_v29  ;;  %v1007_v48 = vmul.f32 %v985_v56, %v3034_v62  ;;  %v1008_v21 = vmul.f32 %v3734_v27, %v985_v56  ;;  %v1009_v8 = vmul.f32 %v3735_v15, %v985_v56  ;;  %v3737_v12 = vld [vmem:[#allocation13_spill] sm:$0xff]  ;;  %v3738_v16 = vld [vmem:[#allocation16_spill] sm:$0xff] }
 0x149   :  { %1026 = vxpose.xlu0.b32.cont [9/16] (narrow) %v3195_v10, 64  ;;  %1050 = vxpose.xlu1.b32.start [1/16] (narrow) %v1002_v0, 64  ;;  %v1010_v23 = vmul.f32 %v985_v56, %v3063_v53  ;;  %v3250_v44 = vmul.f32 %v985_v56, %v3736_v43  ;;  %v3253_v30 = vmul.f32 %v3737_v12, %v985_v56  ;;  %v3754_v0 = vld [vmem:[#allocation25_spill] sm:$0xff] }
 0x14a   :  { %2315 = vmatprep.subr.bf16.mxu0 %v969_v5  ;;  %v3256_v29 = vmul.f32 %v3738_v16, %v985_v56  ;;  %v3259_v62 = vmul.f32 %v985_v56, %v3104_v26  ;;  %v3262_v17 = vmul.f32 %v985_v56, %v3739_v35  ;;  %v3265_v10 = vmul.f32 %v3740_v61, %v985_v56  ;;  %v2463_v53 = vpop.eup %2462  ;;  %v3743_v26 = vld [vmem:[#allocation5_spill] sm:$0xff] }
 0x14b   :  { %v1017_v59 = vmul.f32 %v3111_v2, %v985_v56  ;;  %v958_v6 = vmul.f32 %v2463_v53, %v3143_v40  ;;  %v959_v13 = vmul.f32 %v2463_v53, %v3158_v41  ;;  %v946_v38 = vmul.f32 %v2463_v53, %v3741_v19 }
 0x14c   :  { %2316 = vmatpush3.bf16.msra.mxu0 %v969_v5  ;;  %v947_v54 = vmul.f32 %v2463_v53, %v3742_v46  ;;  %v948_v50 = vmul.f32 %v2463_v53, %v3743_v26  ;;  %v949_v47 = vmul.f32 %v2463_v53, %v3744_v37  ;;  %v950_v3 = vmul.f32 %v2463_v53, %v3745_v63  ;;  %v3750_v5 = vld [vmem:[#allocation22_spill] sm:$0xff] }
 0x14d   :  { %1027 = vxpose.xlu0.b32.cont [10/16] (narrow) %v3201_v32, 64  ;;  %1051 = vxpose.xlu1.b32.cont [2/16] (narrow) %v1003_v60, 64  ;;  %v976_v4 = vpack.c.bf16 %v959_v13, %v958_v6  ;;  %v951_v40 = vmul.f32 %v2463_v53, %v3746_v58  ;;  %v952_v41 = vmul.f32 %v2463_v53, %v3747_v45 }
 0x14e   :  { %v970_v2 = vpack.c.bf16 %v947_v54, %v946_v38  ;;  %v971_v9 = vpack.c.bf16 %v949_v47, %v948_v50  ;;  %v953_v39 = vmul.f32 %v2463_v53, %v3748_v42  ;;  %v954_v7 = vmul.f32 %v2463_v53, %v3749_v28 }
 0x14f   :  { %v955_v32 = vmul.f32 %v2463_v53, %v3750_v5  ;;  %v972_v1 = vpack.c.bf16 %v951_v40, %v950_v3  ;;  %v956_v49 = vmul.f32 %v2463_v53, %v3751_v18  ;;  %v957_v24 = vmul.f32 %v2463_v53, %v3752_v55 }
 0x150   :  { %2325 = vmatprep.subr.bf16.mxu1 %v970_v2  ;;  %v960_v51 = vmul.f32 %v2463_v53, %v3753_v34  ;;  %v973_v52 = vpack.c.bf16 %v953_v39, %v952_v41  ;;  %v961_v60 = vmul.f32 %v2463_v53, %v3754_v0 }
 0x151   :  { %1028 = vxpose.xlu0.b32.cont [11/16] (narrow) %v3207_v36, 64  ;;  %1052 = vxpose.xlu1.b32.cont [3/16] (narrow) %v1004_v25, 64  ;;  %v974_v56 = vpack.c.bf16 %v955_v32, %v954_v7  ;;  %v975_v27 = vpack.c.bf16 %v957_v24, %v956_v49 }
 0x152   :  { %2326 = vmatpush3.bf16.msra.mxu1 %v970_v2  ;;  %v977_v15 = vpack.c.bf16 %v961_v60, %v960_v51 }
 0x153   :  { %2327 = vmatprep.subr.bf16.mxu1 %v971_v9 }
 0x155   :  { %1029 = vxpose.xlu0.b32.cont [12/16] (narrow) %v3213_v22, 64  ;;  %1053 = vxpose.xlu1.b32.cont [4/16] (narrow) %v1005_v11, 64  ;;  %v3297_v22 = vpop.f32.mrb[32].mxu0 }
 0x156   :  { %2328 = vmatpush3.bf16.msra.mxu1 %v971_v9 }
 0x157   :  { %2329 = vmatprep.subr.bf16.mxu1 %v972_v1 }
 0x159   :  { %1030 = vxpose.xlu0.b32.cont [13/16] (narrow) %v3217_v33, 64  ;;  %1054 = vxpose.xlu1.b32.cont [5/16] (narrow) %v1006_v14, 64  ;;  %v3299_v33 = vpop.f32.mrb[33].mxu0 }
 0x15a   :  { %2330 = vmatpush3.bf16.msra.mxu1 %v972_v1 }
 0x15b   :  { %2331 = vmatprep.subr.bf16.mxu1 %v973_v52 }
 0x15d   :  { %1031 = vxpose.xlu0.b32.cont [14/16] (narrow) %v3223_v20, 64  ;;  %1055 = vxpose.xlu1.b32.cont [6/16] (narrow) %v1007_v48, 64  ;;  %v3301_v20 = vpop.f32.mrb[34].mxu0 }
 0x15e   :  { %2332 = vmatpush3.bf16.msra.mxu1 %v973_v52  ;;  %v3305_v25 = vpop.f32.mrb[35].mxu0 }
 0x15f   :  { %2333 = vmatprep.subr.bf16.mxu1 %v974_v56  ;;  %v1378_v14 = vpack.c.bf16 %v3305_v25, %v3299_v33  ;;  %v1091_v33 = vld [vmem:[%s3688_s7 + $0x8] sm:$0xff] }
 0x161   :  { %1032 = vxpose.xlu0.b32.cont [15/16] (narrow) %v3227_v57, 64  ;;  %1056 = vxpose.xlu1.b32.cont [7/16] (narrow) %v1008_v21, 64  ;;  %v3309_v21 = vpop.f32.mrb[36].mxu0 }
 0x162   :  { %2334 = vmatpush3.bf16.msra.mxu1 %v974_v56 }
 0x163   :  { %2335 = vmatprep.subr.bf16.mxu1 %v975_v27 }
 0x165   :  { %1033 = vxpose.xlu0.b32.end [16/16] (narrow) %v3231_v31, 64  ;;  %1057 = vxpose.xlu1.b32.cont [8/16] (narrow) %v1009_v8, 64  ;;  %v3311_v8 = vpop.f32.mrb[37].mxu0 }
 0x166   :  { %2336 = vmatpush3.bf16.msra.mxu1 %v975_v27 }
 0x167   :  { %2337 = vmatprep.subr.bf16.mxu1 %v976_v4 }
 0x169   :  { %1058 = vxpose.xlu1.b32.cont [9/16] (narrow) %v1010_v23, 64  ;;  %v3313_v23 = vpop.f32.mrb[38].mxu0 }
 0x16a   :  { %2338 = vmatpush3.bf16.msra.mxu1 %v976_v4  ;;  %v3317_v12 = vpop.f32.mrb[39].mxu0 }
 0x16b   :  { %2339 = vmatprep.subr.bf16.mxu1 %v977_v15 }
 0x16d   :  { %1059 = vxpose.xlu1.b32.cont [10/16] (narrow) %v3250_v44, 64 }
 0x16e   :  { %2340 = vmatpush3.bf16.msra.mxu1 %v977_v15 }
 0x171   :  { %1060 = vxpose.xlu1.b32.cont [11/16] (narrow) %v3253_v30, 64 }
 0x175   :  { %1061 = vxpose.xlu1.b32.cont [12/16] (narrow) %v3256_v29, 64 }
 0x179   :  { %1062 = vxpose.xlu1.b32.cont [13/16] (narrow) %v3259_v62, 64  ;;  %v3321_v62 = vpop.f32.mrb[40].mxu0 }
 0x17a   :  { %v3323_v35 = vpop.f32.mrb[41].mxu0 }
 0x17d   :  { %1063 = vxpose.xlu1.b32.cont [14/16] (narrow) %v3262_v17, 64  ;;  %v3325_v17 = vpop.f32.mrb[42].mxu0 }
 0x17e   :  { %v3329_v53 = vpop.f32.mrb[43].mxu0 }
 0x17f   :  { %v3333_v19 = vpop.f32.mrb[44].mxu0 }
 0x180   :  { %v3335_v38 = vpop.f32.mrb[45].mxu0 }
 0x181   :  { %1064 = vxpose.xlu1.b32.cont [15/16] (narrow) %v3265_v10, 64  ;;  %v3337_v46 = vpop.f32.mrb[46].mxu0 }
 0x182   :  { %v3341_v50 = vpop.f32.mrb[47].mxu0 }
 0x183   :  { %v3345_v3 = vpop.f32.mrb[48].mxu0 }
 0x184   :  { %v644_v4 = vpop.f32.mrb[49].mxu0 }
 0x185   :  { %1065 = vxpose.xlu1.b32.end [16/16] (narrow) %v1017_v59, 64  ;;  %v3347_v2 = vpop.f32.mrb[50].mxu0 }
 0x186   :  { %v647_v45 = vpop.f32.mrb[51].mxu0 }
 0x187   :  { %v1386_v9 = vpack.c.bf16 %v647_v45, %v644_v4  ;;  %v3352_v39 = vpop.f32.mrb[52].mxu0 }
 0x188   :  { %v3354_v28 = vpop.f32.mrb[53].mxu0 }
 0x189   :  { %v3356_v7 = vpop.f32.mrb[54].mxu0 }
 0x18a   :  { %v3360_v1 = vpop.f32.mrb[55].mxu0 }
 0x18b   :  { %v3364_v24 = vpop.f32.mrb[56].mxu0 }
 0x18c   :  { %v3366_v34 = vpop.f32.mrb[57].mxu0 }
 0x18d   :  { %v3368_v51 = vpop.f32.mrb[58].mxu0 }
 0x18e   :  { %v3372_v0 = vpop.f32.mrb[59].mxu0 }
 0x1a9   :  { %v1034_v36 = vpop.trf.xlu0 }
 0x1ad   :  { %v1035_v57 = vpop.trf.xlu0 }
 0x1ae   :  { %v1082_v11 = vpack.c.bf16 %v1035_v57, %v1034_v36  ;;  %v3376_v36 = vpop.f32.mrb[60].mxu0 }
 0x1af   :  { %v3378_v57 = vpop.f32.mrb[61].mxu0 }
 0x1b0   :  { %2317 = vmatprep.mubr.bf16.mxu0 %v1082_v11  ;;  %v3380_v11 = vpop.f32.mrb[62].mxu0 }
 0x1b1   :  { %v1036_v48 = vpop.trf.xlu0 }
 0x1b5   :  { %v1037_v43 = vpop.trf.xlu0 }
 0x1b6   :  { %v1083_v30 = vpack.c.bf16 %v1037_v43, %v1036_v48 }
 0x1b8   :  { %2318 = vmatmul.mubr.bf16.vlgmr.msra.gmra.mrb[64].mxu0 %v1083_v30  ;;  %v3384_v30 = vpop.f32.mrb[63].mxu0 }
 0x1b9   :  { %v1038_v29 = vpop.trf.xlu0 }
 0x1bd   :  { %v1039_v61 = vpop.trf.xlu0 }
 0x1be   :  { %v1084_v59 = vpack.c.bf16 %v1039_v61, %v1038_v29 }
 0x1c0   :  { %2321 = vmatprep.mubr.bf16.mxu0 %v1084_v59  ;;  %v1092_v59 = vld [vmem:[%s3688_s7 + $0x10] sm:$0xff] }
 0x1c1   :  { %v1040_v13 = vpop.trf.xlu0 }
 0x1c5   :  { %v1041_v54 = vpop.trf.xlu0 }
 0x1c6   :  { %v1085_v37 = vpack.c.bf16 %v1041_v54, %v1040_v13  ;;  %v1090_v13 = vld [vmem:[%s3688_s7] sm:$0xff] }
 0x1c8   :  { %2322 = vmatmul.mubr.bf16.gmra.mrb[68].mxu0 %v1085_v37  ;;  %v1093_v37 = vld [vmem:[%s3688_s7 + $0x18] sm:$0xff] }
 0x1c9   :  { %v1066_v63 = vpop.trf.xlu1  ;;  %2381 = vmatprep.mubr.msk.bf16.mxu0 %vm111_vm0, %v1386_v9 }
 0x1cd   :  { %v1067_v58 = vpop.trf.xlu1 }
 0x1ce   :  { %v1086_v41 = vpack.c.bf16 %v1067_v58, %v1066_v63 }
 0x1d0   :  { %2341 = vmatprep.mubr.bf16.mxu1 %v1086_v41 }
 0x1d1   :  { %v1068_v42 = vpop.trf.xlu1 }
 0x1d5   :  { %v1069_v5 = vpop.trf.xlu1 }
 0x1d6   :  { %v1087_v18 = vpack.c.bf16 %v1069_v5, %v1068_v42 }
 0x1d8   :  { %2342 = vmatmul.mubr.bf16.vlgmr.msra.gmra.mrb[32].mxu1 %v1087_v18 }
 0x1d9   :  { %v1070_v55 = vpop.trf.xlu1 }
 0x1dd   :  { %v1071_v52 = vpop.trf.xlu1 }
 0x1de   :  { %v1088_v60 = vpack.c.bf16 %v1071_v52, %v1070_v55 }
 0x1e0   :  { %2345 = vmatprep.mubr.bf16.mxu1 %v1088_v60  ;;  %v3414_v60 = vld [vmem:[%s3688_s7 + $0x30] sm:$0xff] }
 0x1e1   :  { %v1072_v15 = vpop.trf.xlu1 }
 0x1e5   :  { %v1073_v48 = vpop.trf.xlu1 }
 0x1e6   :  { %v1089_v29 = vpack.c.bf16 %v1073_v48, %v1072_v15  ;;  %v3419_v15 = vld [vmem:[%s3688_s7 + $0x20] sm:$0xff] }
 0x1e8   :  { %2346 = vmatmul.mubr.bf16.gmra.mrb[36].mxu1 %v1089_v29 }
 0x1e9   :  { %2357 = vmatprep.mubr.msk.bf16.mxu1 %vm111_vm0, %v1378_v14 }
 0x28b   :  { %v2319_v54 = vpop.f32.mrb[64].mxu0 }
 0x28c   :  { %v3401_v63 = vadd.f32 %v2319_v54, %v1092_v59  ;;  %v1132_v4 = vpop.f32.mrb[65].mxu0  ;;  %v3424_v54 = vld [vmem:[%s3688_s7 + $0x38] sm:$0xff] }
 0x28d   :  { %v1133_v25 = vadd.f32 %v1132_v4, %v1090_v13  ;;  %v2320_v14 = vpop.f32.mrb[66].mxu0  ;;  %v3429_v4 = vld [vmem:[%s3688_s7 + $0x28] sm:$0xff] }
 0x28e   :  { %v1230_v58 = vsel %vm111_vm0, %v3401_v63, -inf  ;;  %v1144_v45 = vadd.f32 %v2320_v14, %v1093_v37  ;;  %v1135_v41 = vpop.f32.mrb[67].mxu0 }
 0x28f   :  { %v1228_v9 = vsel %vm111_vm0, %v1133_v25, -inf  ;;  %v1136_v42 = vadd.f32 %v1135_v41, %v1091_v33 }
 0x290   :  { %v1231_v5 = vmax.f32 %v1228_v9, %v1230_v58  ;;  %v1232_v18 = vsel %vm111_vm0, %v1144_v45, -inf }
 0x291   :  { %v1229_v55 = vsel %vm111_vm0, %v1136_v42, -inf }
 0x292   :  { %v1233_v52 = vmax.f32 %v1229_v55, %v1232_v18 }
 0x29b   :  { %v2323_v48 = vpop.f32.mrb[68].mxu0 }
 0x29c   :  { %v1148_v29 = vpop.f32.mrb[69].mxu0  ;;  %v1157_v14 = vadd.f32 %v2323_v48, %v3414_v60 }
 0x29d   :  { %v1149_v58 = vadd.f32 %v1148_v29, %v3419_v15  ;;  %v2324_v41 = vpop.f32.mrb[70].mxu0 }
 0x29e   :  { %v1151_v9 = vpop.f32.mrb[71].mxu0  ;;  %v1160_v55 = vadd.f32 %v2324_v41, %v3424_v54  ;;  %v1238_v56 = vsel %vm111_vm0, %v1157_v14, -inf }
 0x29f   :  { %v1234_v18 = vsel %vm111_vm0, %v1149_v58, -inf  ;;  %v1152_v43 = vadd.f32 %v1151_v9, %v3429_v4 }
 0x2a0   :  { %v1235_v61 = vmax.f32 %v1231_v5, %v1234_v18  ;;  %v1240_v40 = vsel %vm111_vm0, %v1160_v55, -inf }
 0x2a1   :  { %v1236_v27 = vsel %vm111_vm0, %v1152_v43, -inf }
 0x2a2   :  { %v1239_v32 = vmax.f32 %v1235_v61, %v1238_v56  ;;  %v1237_v49 = vmax.f32 %v1233_v52, %v1236_v27 }
 0x2a4   :  { %v1241_v48 = vmax.f32 %v1237_v49, %v1240_v40 }
 0x2a6   :  { %v1242_v26 = vmax.f32 %v1239_v32, %v1241_v48 }
 0x2a8   :  { %v1243_v29 = vrot.slane %v1242_v26, 4 }
 0x2aa   :  { %v1244_v47 = vmax.f32 %v1242_v26, %v1243_v29 }
 0x2ab   :  { %v2343_v10 = vpop.f32.mrb[32].mxu1 }
 0x2ac   :  { %v1245_v6 = vrot.slane %v1244_v47, 2  ;;  %v3439_v44 = vadd.f32 %v2343_v10, %v1092_v59  ;;  %v1197_v41 = vpop.f32.mrb[33].mxu1 }
 0x2ad   :  { %v3441_v16 = vadd.f32 %v1197_v41, %v1090_v13  ;;  %v2344_v5 = vpop.f32.mrb[34].mxu1 }
 0x2ae   :  { %v1246_v9 = vmax.f32 %v1244_v47, %v1245_v6  ;;  %v1251_v18 = vsel %vm111_vm0, %v3439_v44, -inf  ;;  %v3445_v56 = vadd.f32 %v2344_v5, %v1093_v37  ;;  %v1200_v27 = vpop.f32.mrb[35].mxu1 }
 0x2af   :  { %v1249_v40 = vsel %vm111_vm0, %v3441_v16, -inf  ;;  %v3449_v32 = vadd.f32 %v1200_v27, %v1091_v33 }
 0x2b0   :  { %v1247_v26 = vrot.slane %v1246_v9, 1  ;;  %v1252_v49 = vmax.f32 %v1249_v40, %v1251_v18  ;;  %v1253_v10 = vsel %vm111_vm0, %v3445_v56, -inf }
 0x2b1   :  { %v1250_v61 = vsel %vm111_vm0, %v3449_v32, -inf }
 0x2b2   :  { %v1248_v6 = vmax.f32 %v1246_v9, %v1247_v26  ;;  %v1254_v47 = vmax.f32 %v1250_v61, %v1253_v10 }
 0x2b4   :  { %v1270_v59 = vsub.f32 %v1133_v25, %v1248_v6  ;;  %v1271_v13 = vsub.f32 %v1136_v42, %v1248_v6  ;;  %v1272_v37 = vsub.f32 %v3401_v63, %v1248_v6  ;;  %v1273_v52 = vsub.f32 %v1144_v45, %v1248_v6 }
 0x2b5   :  { %v1274_v48 = vsub.f32 %v1149_v58, %v1248_v6  ;;  %v1275_v29 = vsub.f32 %v1152_v43, %v1248_v6  ;;  %v1276_v41 = vsub.f32 %v1157_v14, %v1248_v6  ;;  %v1277_v33 = vsub.f32 %v1160_v55, %v1248_v6 }
 0x2b6   :  { %v1286_v5 = vmul.f32 1.442695, %v1270_v59  ;;  %v1288_v27 = vmul.f32 1.442695, %v1271_v13  ;;  %v1290_v18 = vmul.f32 1.442695, %v1272_v37 }
 0x2b7   :  { %v1292_v40 = vmul.f32 1.442695, %v1273_v52  ;;  %v1294_v31 = vmul.f32 1.442695, %v1274_v48  ;;  %v1296_v9 = vmul.f32 1.442695, %v1275_v29 }
 0x2b8   :  { %2464 = vpow2.f32 %v1286_v5  ;;  %v1298_v42 = vmul.f32 1.442695, %v1276_v41  ;;  %v1300_v14 = vmul.f32 1.442695, %v1277_v33 }
 0x2b9   :  { %2466 = vpow2.f32 %v1288_v27 }
 0x2ba   :  { %2468 = vpow2.f32 %v1290_v18 }
 0x2bb   :  { %2470 = vpow2.f32 %v1292_v40  ;;  %v2347_v26 = vpop.f32.mrb[36].mxu1 }
 0x2bc   :  { %v1213_v25 = vpop.f32.mrb[37].mxu1  ;;  %2472 = vpow2.f32 %v1294_v31  ;;  %v3457_v63 = vadd.f32 %v2347_v26, %v3414_v60 }
 0x2bd   :  { %v3460_v43 = vadd.f32 %v1213_v25, %v3419_v15  ;;  %v2348_v45 = vpop.f32.mrb[38].mxu1  ;;  %2474 = vpow2.f32 %v1296_v9 }
 0x2be   :  { %v1216_v58 = vpop.f32.mrb[39].mxu1  ;;  %v3465_v10 = vadd.f32 %v2348_v45, %v3424_v54  ;;  %2476 = vpow2.f32 %v1298_v42  ;;  %v1259_v60 = vsel %vm111_vm0, %v3457_v63, -inf }
 0x2bf   :  { %v1255_v55 = vsel %vm111_vm0, %v3460_v43, -inf  ;;  %v1217_v61 = vadd.f32 %v1216_v58, %v3429_v4  ;;  %2478 = vpow2.f32 %v1300_v14 }
 0x2c0   :  { %v1256_v31 = vmax.f32 %v1252_v49, %v1255_v55  ;;  %v1261_v4 = vsel %vm111_vm0, %v3465_v10, -inf }
 0x2c1   :  { %v1257_v15 = vsel %vm111_vm0, %v1217_v61, -inf }
 0x2c2   :  { %v3471_v6 = vpop.eup %2464  ;;  %v1260_v59 = vmax.f32 %v1256_v31, %v1259_v60  ;;  %v1258_v13 = vmax.f32 %v1254_v47, %v1257_v15 }
 0x2c3   :  { %v3473_v37 = vpop.eup %2466  ;;  %v1318_v54 = vsel %vm111_vm0, %v3471_v6, 0.0 }
 0x2c4   :  { %v3479_v49 = vpop.eup %2468  ;;  %v1319_v52 = vsel %vm111_vm0, %v3473_v37, 0.0  ;;  %v1262_v48 = vmax.f32 %v1258_v13, %v1261_v4 }
 0x2c5   :  { %v3483_v29 = vpop.eup %2470  ;;  %v1320_v41 = vadd.f32 %v1319_v52, %v1318_v54  ;;  %v1321_v47 = vsel %vm111_vm0, %v3479_v49, 0.0 }
 0x2c6   :  { %v1263_v33 = vmax.f32 %v1260_v59, %v1262_v48  ;;  %v3487_v5 = vpop.eup %2472  ;;  %v1323_v18 = vsel %vm111_vm0, %v3483_v29, 0.0 }
 0x2c7   :  { %v1322_v27 = vadd.f32 %v1321_v47, %v1320_v41  ;;  %v3491_v9 = vpop.eup %2474  ;;  %v1325_v25 = vsel %vm111_vm0, %v3487_v5, 0.0 }
 0x2c8   :  { %v1264_v40 = vrot.slane %v1263_v33, 4  ;;  %v3495_v45 = vpop.eup %2476  ;;  %v1327_v58 = vsel %vm111_vm0, %v3491_v9, 0.0 }
 0x2c9   :  { %v1324_v26 = vadd.f32 %v1323_v18, %v1322_v27  ;;  %v3499_v31 = vpop.eup %2478  ;;  %v1329_v15 = vsel %vm111_vm0, %v3495_v45, 0.0 }
 0x2ca   :  { %v1265_v42 = vmax.f32 %v1263_v33, %v1264_v40  ;;  %v1331_v54 = vsel %vm111_vm0, %v3499_v31, 0.0 }
 0x2cb   :  { %v1326_v14 = vadd.f32 %v1325_v25, %v1324_v26 }
 0x2cc   :  { %v1266_v55 = vrot.slane %v1265_v42, 2 }
 0x2cd   :  { %v1328_v60 = vadd.f32 %v1327_v58, %v1326_v14 }
 0x2ce   :  { %v1267_v59 = vmax.f32 %v1265_v42, %v1266_v55 }
 0x2cf   :  { %v1330_v13 = vadd.f32 %v1329_v15, %v1328_v60 }
 0x2d0   :  { %v1268_v4 = vrot.slane %v1267_v59, 1 }
 0x2d1   :  { %v1332_v52 = vadd.f32 %v1331_v54, %v1330_v13 }
 0x2d2   :  { %v1269_v48 = vmax.f32 %v1267_v59, %v1268_v4 }
 0x2d3   :  { %v1333_v41 = vrot.slane %v1332_v52, 4 }
 0x2d4   :  { %v1278_v47 = vsub.f32 %v3441_v16, %v1269_v48  ;;  %v1279_v33 = vsub.f32 %v3449_v32, %v1269_v48  ;;  %v1280_v27 = vsub.f32 %v3439_v44, %v1269_v48  ;;  %v1281_v18 = vsub.f32 %v3445_v56, %v1269_v48 }
 0x2d5   :  { %v1334_v40 = vadd.f32 %v1333_v41, %v1332_v52  ;;  %v1282_v26 = vsub.f32 %v3460_v43, %v1269_v48  ;;  %v1283_v25 = vsub.f32 %v1217_v61, %v1269_v48  ;;  %v1284_v42 = vsub.f32 %v3457_v63, %v1269_v48 }
 0x2d6   :  { %v1285_v14 = vsub.f32 %v3465_v10, %v1269_v48  ;;  %v1302_v58 = vmul.f32 1.442695, %v1278_v47  ;;  %v1304_v55 = vmul.f32 1.442695, %v1279_v33  ;;  %v1306_v60 = vmul.f32 1.442695, %v1280_v27 }
 0x2d7   :  { %v1335_v15 = vrot.slane %v1334_v40, 2  ;;  %v1308_v59 = vmul.f32 1.442695, %v1281_v18  ;;  %v1310_v16 = vmul.f32 1.442695, %v1282_v26 }
 0x2d8   :  { %2480 = vpow2.f32 %v1302_v58  ;;  %v1312_v44 = vmul.f32 1.442695, %v1283_v25  ;;  %v1314_v61 = vmul.f32 1.442695, %v1284_v42  ;;  %v1316_v63 = vmul.f32 1.442695, %v1285_v14 }
 0x2d9   :  { %v1336_v32 = vadd.f32 %v1335_v15, %v1334_v40  ;;  %2482 = vpow2.f32 %v1304_v55 }
 0x2da   :  { %2484 = vpow2.f32 %v1306_v60 }
 0x2db   :  { %v1337_v56 = vrot.slane %v1336_v32, 1  ;;  %2486 = vpow2.f32 %v1308_v59 }
 0x2dc   :  { %2488 = vpow2.f32 %v1310_v16 }
 0x2dd   :  { %v1338_v43 = vadd.f32 %v1337_v56, %v1336_v32  ;;  %2490 = vpow2.f32 %v1312_v44 }
 0x2df   :  { %2492 = vrcp.f32 %v1338_v43 }
 0x2e0   :  { %2494 = vpow2.f32 %v1314_v61 }
 0x2e1   :  { %2496 = vpow2.f32 %v1316_v63 }
 0x2e2   :  { %v3512_v10 = vpop.eup %2480 }
 0x2e3   :  { %v3514_v13 = vpop.eup %2482  ;;  %v1339_v54 = vsel %vm111_vm0, %v3512_v10, 0.0 }
 0x2e4   :  { %v3518_v4 = vpop.eup %2484  ;;  %v1340_v52 = vsel %vm111_vm0, %v3514_v13, 0.0 }
 0x2e5   :  { %v3522_v48 = vpop.eup %2486  ;;  %v1341_v41 = vadd.f32 %v1340_v52, %v1339_v54  ;;  %v1342_v33 = vsel %vm111_vm0, %v3518_v4, 0.0 }
 0x2e6   :  { %v3524_v47 = vpop.eup %2488  ;;  %v1344_v40 = vsel %vm111_vm0, %v3522_v48, 0.0 }
 0x2e7   :  { %v1343_v27 = vadd.f32 %v1342_v33, %v1341_v41  ;;  %v2491_v18 = vpop.eup %2490  ;;  %v1346_v42 = vsel %vm111_vm0, %v3524_v47, 0.0 }
 0x2e8   :  { %v1348_v16 = vsel %vm111_vm0, %v2491_v18, 0.0 }
 0x2e9   :  { %v2493_v26 = vpop.eup %2492  ;;  %v1345_v25 = vadd.f32 %v1344_v40, %v1343_v27 }
 0x2ea   :  { %v1362_v14 = vmul.f32 %v2493_v26, %v3471_v6  ;;  %v1363_v58 = vmul.f32 %v2493_v26, %v3473_v37  ;;  %v1364_v55 = vmul.f32 %v2493_v26, %v3479_v49  ;;  %v1365_v60 = vmul.f32 %v2493_v26, %v3483_v29  ;;  %v2495_v15 = vpop.eup %2494 }
 0x2eb   :  { %v1347_v59 = vadd.f32 %v1346_v42, %v1345_v25  ;;  %v1366_v32 = vmul.f32 %v2493_v26, %v3487_v5  ;;  %v1367_v44 = vmul.f32 %v2493_v26, %v3491_v9  ;;  %v1368_v61 = vmul.f32 %v2493_v26, %v3495_v45  ;;  %v2497_v63 = vpop.eup %2496 }
 0x2ec   :  { %v1394_v56 = vpack.c.bf16 %v1363_v58, %v1362_v14  ;;  %v1395_v43 = vpack.c.bf16 %v1365_v60, %v1364_v55  ;;  %v1369_v6 = vmul.f32 %v2493_v26, %v3499_v31  ;;  %v1350_v49 = vsel %vm111_vm0, %v2495_v15, 0.0  ;;  %v2452_v31 = vld [vmem:[%s3685_s4] sm:$0xff]   ;;  %v2453_v26 = vld [vmem:[%s3685_s4 + $0x8] sm:$0xff]   ;;  %v2454_v58 = vld [vmem:[%s3685_s4 + $0x10] sm:$0xff]  }
 0x2ed   :  { %v1349_v37 = vadd.f32 %v1348_v16, %v1347_v59  ;;  %v1396_v54 = vpack.c.bf16 %v1367_v44, %v1366_v32  ;;  %v1352_v41 = vsel %vm111_vm0, %v2497_v63, 0.0  ;;  %v3755_v42 = vpack.c.bf16 %v3301_v20, %v3297_v22  ;;  %v2455_v22 = vld [vmem:[%s3685_s4 + $0x18] sm:$0xff]  }
 0x2ee   :  { %2349 = vmatprep.subr.bf16.mxu1 %v1394_v56  ;;  %v1397_v29 = vpack.c.bf16 %v1369_v6, %v1368_v61  ;;  %v3756_v14 = vpack.c.bf16 %v3317_v12, %v3311_v8  ;;  %v3757_v20 = vpack.c.bf16 %v3313_v23, %v3309_v21  ;;  %v3758_v8 = vpack.c.bf16 %v3329_v53, %v3323_v35 }
 0x2ef   :  { %v1351_v52 = vadd.f32 %v1350_v49, %v1349_v37  ;;  %2350 = vmatpush3.bf16.msra.mxu1 %v1394_v56  ;;  %v3759_v61 = vpack.c.bf16 %v3325_v17, %v3321_v62  ;;  %v3762_v62 = vpack.c.bf16 %v3347_v2, %v3345_v3  ;;  %v3763_v17 = vpack.c.bf16 %v3360_v1, %v3354_v28 }
 0x2f0   :  { %2351 = vmatprep.subr.bf16.mxu1 %v1395_v43  ;;  %v3768_v3 = vpack.c.bf16 %v3380_v11, %v3376_v36 }
 0x2f1   :  { %v1353_v5 = vadd.f32 %v1352_v41, %v1351_v52 }
 0x2f3   :  { %v1354_v9 = vrot.slane %v1353_v5, 4  ;;  %2352 = vmatpush3.bf16.msra.mxu1 %v1395_v43 }
 0x2f4   :  { %2353 = vmatprep.subr.bf16.mxu1 %v1396_v54 }
 0x2f5   :  { %v1355_v33 = vadd.f32 %v1354_v9, %v1353_v5 }
 0x2f7   :  { %v1356_v45 = vrot.slane %v1355_v33, 2  ;;  %2354 = vmatpush3.bf16.msra.mxu1 %v1396_v54 }
 0x2f8   :  { %2355 = vmatprep.subr.bf16.mxu1 %v1397_v29 }
 0x2f9   :  { %v1357_v27 = vadd.f32 %v1356_v45, %v1355_v33 }
 0x2fb   :  { %v1358_v40 = vrot.slane %v1357_v27, 1  ;;  %2356 = vmatpush3.bf16.msra.mxu1 %v1397_v29 }
 0x2fc   :  { %2397 = vmatprep.subr.bf16.mxu1 %v2452_v31 }
 0x2fd   :  { %v1359_v25 = vadd.f32 %v1358_v40, %v1357_v27 }
 0x2fe   :  { %2358 = vmatmul.mubr.msk.bf16.vlgmr.msra.gmra.mrb[40].mxu1 %vm111_vm0, %v3755_v42 }
 0x2ff   :  { %2498 = vrcp.f32 %v1359_v25  ;;  %2361 = vmatprep.mubr.msk.bf16.mxu1 %vm111_vm0, %v3756_v14  ;;  %2398 = vmatpush3.bf16.msra.mxu1 %v2452_v31 }
 0x300   :  { %2399 = vmatprep.subr.bf16.mxu1 %v2453_v26 }
 0x303   :  { %2400 = vmatpush3.bf16.msra.mxu1 %v2453_v26 }
 0x304   :  { %2401 = vmatprep.subr.bf16.mxu1 %v2454_v58 }
 0x306   :  { %2362 = vmatmul.mubr.msk.bf16.gmra.mrb[44].mxu1 %vm111_vm0, %v3757_v20 }
 0x307   :  { %2365 = vmatprep.mubr.msk.bf16.mxu1 %vm111_vm0, %v3758_v8  ;;  %2402 = vmatpush3.bf16.msra.mxu1 %v2454_v58 }
 0x308   :  { %2403 = vmatprep.subr.bf16.mxu1 %v2455_v22 }
 0x309   :  { %v2499_v12 = vpop.eup %2498 }
 0x30a   :  { %v1370_v55 = vmul.f32 %v2499_v12, %v3512_v10  ;;  %v1371_v60 = vmul.f32 %v2499_v12, %v3514_v13  ;;  %v1372_v59 = vmul.f32 %v2499_v12, %v3518_v4  ;;  %v1373_v16 = vmul.f32 %v2499_v12, %v3522_v48 }
 0x30b   :  { %v1374_v21 = vmul.f32 %v2499_v12, %v3524_v47  ;;  %v1375_v23 = vmul.f32 %v2499_v12, %v2491_v18  ;;  %v1376_v32 = vmul.f32 %v2499_v12, %v2495_v15  ;;  %v1377_v44 = vmul.f32 %v2499_v12, %v2497_v63  ;;  %2404 = vmatpush3.bf16.msra.mxu1 %v2455_v22 }
 0x30c   :  { %v1398_v35 = vpack.c.bf16 %v1371_v60, %v1370_v55  ;;  %v1399_v53 = vpack.c.bf16 %v1373_v16, %v1372_v59  ;;  %v3760_v10 = vpack.c.bf16 %v3341_v50, %v3335_v38  ;;  %v3761_v13 = vpack.c.bf16 %v3337_v46, %v3333_v19 }
 0x30d   :  { %v1400_v56 = vpack.c.bf16 %v1375_v23, %v1374_v21  ;;  %v1401_v43 = vpack.c.bf16 %v1377_v44, %v1376_v32  ;;  %v3764_v38 = vpack.c.bf16 %v3356_v7, %v3352_v39  ;;  %v3765_v19 = vpack.c.bf16 %v3372_v0, %v3366_v34  ;;  %v3635_v32 = vld [vmem:[%s3686_s5] ss:$0 sm:$0xff]  ;;  %s2524_s5 = smov [#allocation2]  }
 0x30e   :  { %2366 = vmatmul.mubr.msk.bf16.gmra.mrb[48].mxu1 %vm111_vm0, %v3759_v61  ;;  %2373 = vmatprep.subr.bf16.mxu0 %v1398_v35  ;;  %v3766_v46 = vpack.c.bf16 %v3368_v51, %v3364_v24  ;;  %v3767_v50 = vpack.c.bf16 %v3384_v30, %v3378_v57  ;;  %s1945_s19 = sshll.u32 %s2524_s5, 4  ;;  %s1946_s19 = int_to_ptr.vmem [resolvable:$true] %s1945_s19 }
 0x30f   :  { %2369 = vmatprep.mubr.msk.bf16.mxu1 %vm111_vm0, %v3760_v10  ;;  %2374 = vmatpush3.bf16.msra.mxu0 %v1398_v35  ;;  %s2500_s3 = scalar_lea.vmem %s1946_s19, 4096  ;;  %p2505_p1 = scmp.lt.s32.totalorder %s1946_s19, %s1946_s19 }
 0x310   :  { %2375 = vmatprep.subr.bf16.mxu0 %v1399_v53  ;;  %p2501_p0 = scmp.ne.s32.totalorder %s1946_s19, %s2500_s3  ;;  %p2506_p2 = scmp.lt.s32.totalorder %s2500_s3, %s2500_s3 }
 0x312   :  { %p2507_p3 = por %p2506_p2, %p2505_p1 }
 0x313   :  { %2376 = vmatpush3.bf16.msra.mxu0 %v1399_v53 }
 0x314   :  { %2377 = vmatprep.subr.bf16.mxu0 %v1400_v56  ;;  %p2508_p4 = pnand %p2507_p3, %p2501_p0 }
 0x316   :  { %2370 = vmatmul.mubr.msk.bf16.gmra.mrb[52].mxu1 %vm111_vm0, %v3761_v13 }
 0x317   :  { %2378 = vmatpush3.bf16.msra.mxu0 %v1400_v56 }
 0x318   :  { %2379 = vmatprep.subr.bf16.mxu0 %v1401_v43 }
 0x31b   :  { %2380 = vmatpush3.bf16.msra.mxu0 %v1401_v43 }
 0x31e   :  { %2382 = vmatmul.mubr.msk.bf16.vlgmr.msra.gmra.mrb[72].mxu0 %vm111_vm0, %v3762_v62 }
 0x31f   :  { %2385 = vmatprep.mubr.msk.bf16.mxu0 %vm111_vm0, %v3763_v17 }
 0x326   :  { %2386 = vmatmul.mubr.msk.bf16.gmra.mrb[76].mxu0 %vm111_vm0, %v3764_v38 }
 0x327   :  { %2389 = vmatprep.mubr.msk.bf16.mxu0 %vm111_vm0, %v3765_v19 }
 0x32e   :  { %2390 = vmatmul.mubr.msk.bf16.gmra.mrb[80].mxu0 %vm111_vm0, %v3766_v46 }
 0x32f   :  { %2393 = vmatprep.mubr.msk.bf16.mxu0 %vm111_vm0, %v3767_v50 }
 0x336   :  { %2394 = vmatmul.mubr.msk.bf16.gmra.mrb[84].mxu0 %vm111_vm0, %v3768_v3 }
 0x3d1   :  { %v2359_v2 = vpop.f32.mrb[40].mxu1 }
 0x3d2   :  { %v1460_v39 = vpop.f32.mrb[41].mxu1 }
 0x3d3   :  { %v2360_v28 = vpop.f32.mrb[42].mxu1 }
 0x3d4   :  { %v1645_v7 = vpack.c.bf16 %v2360_v28, %v2359_v2  ;;  %v1463_v1 = vpop.f32.mrb[43].mxu1 }
 0x3d5   :  { %v1644_v34 = vpack.c.bf16 %v1463_v1, %v1460_v39 }
 0x3d7   :  { %2405 = vmatprep.mubr.msk.bf16.mxu1 %vm111_vm0, %v1644_v34 }
 0x3d8   :  { %2406 = vmatmul.mubr.msk.bf16.vlgmr.msra.gmra.mrb[56].mxu1 %vm111_vm0, %v1645_v7 }
 0x3d9   :  { %v2363_v24 = vpop.f32.mrb[44].mxu1 }
 0x3da   :  { %v1476_v51 = vpop.f32.mrb[45].mxu1 }
 0x3db   :  { %v2364_v0 = vpop.f32.mrb[46].mxu1 }
 0x3dc   :  { %v1647_v57 = vpack.c.bf16 %v2364_v0, %v2363_v24  ;;  %v1479_v30 = vpop.f32.mrb[47].mxu1 }
 0x3dd   :  { %v1646_v4 = vpack.c.bf16 %v1479_v30, %v1476_v51 }
 0x3df   :  { %2409 = vmatprep.mubr.msk.bf16.mxu1 %vm111_vm0, %v1646_v4 }
 0x3e0   :  { %2410 = vmatmul.mubr.msk.bf16.gmra.mrb[60].mxu1 %vm111_vm0, %v1647_v57 }
 0x3e1   :  { %v2367_v36 = vpop.f32.mrb[48].mxu1 }
 0x3e2   :  { %v1492_v11 = vpop.f32.mrb[49].mxu1 }
 0x3e3   :  { %v2368_v48 = vpop.f32.mrb[50].mxu1 }
 0x3e4   :  { %v1649_v47 = vpack.c.bf16 %v2368_v48, %v2367_v36  ;;  %v1495_v18 = vpop.f32.mrb[51].mxu1 }
 0x3e5   :  { %v1648_v15 = vpack.c.bf16 %v1495_v18, %v1492_v11 }
 0x3e7   :  { %2413 = vmatprep.mubr.msk.bf16.mxu1 %vm111_vm0, %v1648_v15 }
 0x3e8   :  { %2414 = vmatmul.mubr.msk.bf16.gmra.mrb[64].mxu1 %vm111_vm0, %v1649_v47 }
 0x3e9   :  { %v2371_v6 = vpop.f32.mrb[52].mxu1 }
 0x3ea   :  { %v1508_v63 = vpop.f32.mrb[53].mxu1 }
 0x3eb   :  { %v2372_v37 = vpop.f32.mrb[54].mxu1 }
 0x3ec   :  { %v1651_v54 = vpack.c.bf16 %v2372_v37, %v2371_v6  ;;  %v1511_v49 = vpop.f32.mrb[55].mxu1 }
 0x3ed   :  { %v1650_v29 = vpack.c.bf16 %v1511_v49, %v1508_v63 }
 0x3ef   :  { %2417 = vmatprep.mubr.msk.bf16.mxu1 %vm111_vm0, %v1650_v29 }
 0x3f0   :  { %2418 = vmatmul.mubr.msk.bf16.gmra.mrb[68].mxu1 %vm111_vm0, %v1651_v54 }
 0x3f1   :  { %v2383_v52 = vpop.f32.mrb[72].mxu0 }
 0x3f2   :  { %v1581_v41 = vpop.f32.mrb[73].mxu0 }
 0x3f3   :  { %v2384_v5 = vpop.f32.mrb[74].mxu0 }
 0x3f4   :  { %v1653_v9 = vpack.c.bf16 %v2384_v5, %v2383_v52  ;;  %v1584_v33 = vpop.f32.mrb[75].mxu0 }
 0x3f5   :  { %v1652_v45 = vpack.c.bf16 %v1584_v33, %v1581_v41 }
 0x3f7   :  { %2421 = vmatprep.mubr.msk.bf16.mxu1 %vm111_vm0, %v1652_v45 }
 0x3f8   :  { %2422 = vmatmul.mubr.msk.bf16.gmra.mrb[72].mxu1 %vm111_vm0, %v1653_v9 }
 0x3f9   :  { %v2387_v31 = vpop.f32.mrb[76].mxu0 }
 0x3fa   :  { %v1597_v27 = vpop.f32.mrb[77].mxu0 }
 0x3fb   :  { %v2388_v40 = vpop.f32.mrb[78].mxu0 }
 0x3fc   :  { %v1655_v26 = vpack.c.bf16 %v2388_v40, %v2387_v31  ;;  %v1600_v25 = vpop.f32.mrb[79].mxu0 }
 0x3fd   :  { %v1654_v42 = vpack.c.bf16 %v1600_v25, %v1597_v27 }
 0x3ff   :  { %2425 = vmatprep.mubr.msk.bf16.mxu1 %vm111_vm0, %v1654_v42 }
 0x400   :  { %2426 = vmatmul.mubr.msk.bf16.gmra.mrb[76].mxu1 %vm111_vm0, %v1655_v26 }
 0x401   :  { %v2391_v14 = vpop.f32.mrb[80].mxu0 }
 0x402   :  { %v1613_v58 = vpop.f32.mrb[81].mxu0 }
 0x403   :  { %v2392_v22 = vpop.f32.mrb[82].mxu0 }
 0x404   :  { %v1657_v20 = vpack.c.bf16 %v2392_v22, %v2391_v14  ;;  %v1616_v8 = vpop.f32.mrb[83].mxu0 }
 0x405   :  { %v1656_v12 = vpack.c.bf16 %v1616_v8, %v1613_v58 }
 0x407   :  { %2429 = vmatprep.mubr.msk.bf16.mxu1 %vm111_vm0, %v1656_v12 }
 0x408   :  { %2430 = vmatmul.mubr.msk.bf16.gmra.mrb[80].mxu1 %vm111_vm0, %v1657_v20 }
 0x409   :  { %v2395_v55 = vpop.f32.mrb[84].mxu0 }
 0x40a   :  { %v1629_v60 = vpop.f32.mrb[85].mxu0 }
 0x40b   :  { %v2396_v59 = vpop.f32.mrb[86].mxu0 }
 0x40c   :  { %v1659_v16 = vpack.c.bf16 %v2396_v59, %v2395_v55  ;;  %v1632_v21 = vpop.f32.mrb[87].mxu0 }
 0x40d   :  { %v1658_v23 = vpack.c.bf16 %v1632_v21, %v1629_v60 }
 0x40f   :  { %2433 = vmatprep.mubr.msk.bf16.mxu1 %vm111_vm0, %v1658_v23 }
 0x410   :  { %2434 = vmatmul.mubr.msk.bf16.gmra.mrb[84].mxu1 %vm111_vm0, %v1659_v16 }
 0x4ab   :  { %v2407_v44 = vpop.f32.mrb[56].mxu1 }
 0x4ac   :  { %v1790_v35 = vadd.f32 %v2407_v44, %v3635_v32  ;;  %v1781_v53 = vpop.f32.mrb[57].mxu1 }
 0x4ad   :  { %v1782_v56 = vadd.f32 %v3635_v32, %v1781_v53  ;;  %v2408_v43 = vpop.f32.mrb[58].mxu1 }
 0x4ae   :  { %1910 = vst [vmem:[#allocation2 + $0x10] sm:$0xff] %v1790_v35  ;;  %v1793_v61 = vadd.f32 %v2408_v43, %v3635_v32  ;;  %v1784_v10 = vpop.f32.mrb[59].mxu1 }
 0x4af   :  { %1908 = vst [vmem:[#allocation2] sm:$0xff] %v1782_v56  ;;  %v1785_v13 = vadd.f32 %v3635_v32, %v1784_v10 }
 0x4b0   :  { %1911 = vst [vmem:[#allocation2 + $0x18] sm:$0xff] %v1793_v61 }
 0x4b1   :  { %1909 = vst [vmem:[#allocation2 + $0x8] sm:$0xff] %v1785_v13 }
 0x4b3   :  { %v2411_v62 = vpop.f32.mrb[60].mxu1 }
 0x4b4   :  { %v1806_v17 = vadd.f32 %v2411_v62, %v3635_v32  ;;  %v1797_v38 = vpop.f32.mrb[61].mxu1 }
 0x4b5   :  { %v1798_v19 = vadd.f32 %v3635_v32, %v1797_v38  ;;  %v2412_v46 = vpop.f32.mrb[62].mxu1 }
 0x4b6   :  { %1914 = vst [vmem:[#allocation2 + $0x30] sm:$0xff] %v1806_v17  ;;  %v1809_v50 = vadd.f32 %v2412_v46, %v3635_v32  ;;  %v1800_v3 = vpop.f32.mrb[63].mxu1 }
 0x4b7   :  { %1912 = vst [vmem:[#allocation2 + $0x20] sm:$0xff] %v1798_v19  ;;  %v1801_v2 = vadd.f32 %v3635_v32, %v1800_v3 }
 0x4b8   :  { %1915 = vst [vmem:[#allocation2 + $0x38] sm:$0xff] %v1809_v50 }
 0x4b9   :  { %1913 = vst [vmem:[#allocation2 + $0x28] sm:$0xff] %v1801_v2 }
 0x4bb   :  { %v2415_v39 = vpop.f32.mrb[64].mxu1 }
 0x4bc   :  { %v1822_v28 = vadd.f32 %v2415_v39, %v3635_v32  ;;  %v1813_v7 = vpop.f32.mrb[65].mxu1 }
 0x4bd   :  { %v1814_v1 = vadd.f32 %v3635_v32, %v1813_v7  ;;  %v2416_v34 = vpop.f32.mrb[66].mxu1 }
 0x4be   :  { %1918 = vst [vmem:[#allocation2 + $0x50] sm:$0xff] %v1822_v28  ;;  %v1825_v24 = vadd.f32 %v2416_v34, %v3635_v32  ;;  %v1816_v51 = vpop.f32.mrb[67].mxu1 }
 0x4bf   :  { %1916 = vst [vmem:[#allocation2 + $0x40] sm:$0xff] %v1814_v1  ;;  %v1817_v0 = vadd.f32 %v3635_v32, %v1816_v51 }
 0x4c0   :  { %1919 = vst [vmem:[#allocation2 + $0x58] sm:$0xff] %v1825_v24 }
 0x4c1   :  { %1917 = vst [vmem:[#allocation2 + $0x48] sm:$0xff] %v1817_v0 }
 0x4c3   :  { %v2419_v57 = vpop.f32.mrb[68].mxu1 }
 0x4c4   :  { %v1838_v30 = vadd.f32 %v2419_v57, %v3635_v32  ;;  %v1829_v4 = vpop.f32.mrb[69].mxu1 }
 0x4c5   :  { %v1830_v36 = vadd.f32 %v3635_v32, %v1829_v4  ;;  %v2420_v11 = vpop.f32.mrb[70].mxu1 }
 0x4c6   :  { %1922 = vst [vmem:[#allocation2 + $0x70] sm:$0xff] %v1838_v30  ;;  %v1841_v48 = vadd.f32 %v2420_v11, %v3635_v32  ;;  %v1832_v47 = vpop.f32.mrb[71].mxu1 }
 0x4c7   :  { %1920 = vst [vmem:[#allocation2 + $0x60] sm:$0xff] %v1830_v36  ;;  %v1833_v18 = vadd.f32 %v3635_v32, %v1832_v47 }
 0x4c8   :  { %1923 = vst [vmem:[#allocation2 + $0x78] sm:$0xff] %v1841_v48 }
 0x4c9   :  { %1921 = vst [vmem:[#allocation2 + $0x68] sm:$0xff] %v1833_v18 }
 0x4cb   :  { %v2423_v15 = vpop.f32.mrb[72].mxu1 }
 0x4cc   :  { %v1854_v6 = vadd.f32 %v2423_v15, %v3635_v32  ;;  %v1845_v63 = vpop.f32.mrb[73].mxu1 }
 0x4cd   :  { %v1846_v37 = vadd.f32 %v3635_v32, %v1845_v63  ;;  %v2424_v54 = vpop.f32.mrb[74].mxu1 }
 0x4ce   :  { %1926 = vst [vmem:[#allocation2 + $0x90] sm:$0xff] %v1854_v6  ;;  %v1857_v49 = vadd.f32 %v2424_v54, %v3635_v32  ;;  %v1848_v29 = vpop.f32.mrb[75].mxu1 }
 0x4cf   :  { %1924 = vst [vmem:[#allocation2 + $0x80] sm:$0xff] %v1846_v37  ;;  %v1849_v52 = vadd.f32 %v3635_v32, %v1848_v29 }
 0x4d0   :  { %1927 = vst [vmem:[#allocation2 + $0x98] sm:$0xff] %v1857_v49 }
 0x4d1   :  { %1925 = vst [vmem:[#allocation2 + $0x88] sm:$0xff] %v1849_v52 }
 0x4d3   :  { %v2427_v41 = vpop.f32.mrb[76].mxu1 }
 0x4d4   :  { %v1870_v5 = vadd.f32 %v2427_v41, %v3635_v32  ;;  %v1861_v9 = vpop.f32.mrb[77].mxu1 }
 0x4d5   :  { %v1862_v33 = vadd.f32 %v3635_v32, %v1861_v9  ;;  %v2428_v45 = vpop.f32.mrb[78].mxu1 }
 0x4d6   :  { %1930 = vst [vmem:[#allocation2 + $0xb0] sm:$0xff] %v1870_v5  ;;  %v1873_v31 = vadd.f32 %v2428_v45, %v3635_v32  ;;  %v1864_v27 = vpop.f32.mrb[79].mxu1 }
 0x4d7   :  { %1928 = vst [vmem:[#allocation2 + $0xa0] sm:$0xff] %v1862_v33  ;;  %v1865_v40 = vadd.f32 %v3635_v32, %v1864_v27 }
 0x4d8   :  { %1931 = vst [vmem:[#allocation2 + $0xb8] sm:$0xff] %v1873_v31 }
 0x4d9   :  { %1929 = vst [vmem:[#allocation2 + $0xa8] sm:$0xff] %v1865_v40 }
 0x4db   :  { %v2431_v26 = vpop.f32.mrb[80].mxu1 }
 0x4dc   :  { %v1886_v25 = vadd.f32 %v2431_v26, %v3635_v32  ;;  %v1877_v42 = vpop.f32.mrb[81].mxu1 }
 0x4dd   :  { %v1878_v14 = vadd.f32 %v3635_v32, %v1877_v42  ;;  %v2432_v58 = vpop.f32.mrb[82].mxu1 }
 0x4de   :  { %1934 = vst [vmem:[#allocation2 + $0xd0] sm:$0xff] %v1886_v25  ;;  %v1889_v22 = vadd.f32 %v2432_v58, %v3635_v32  ;;  %v1880_v20 = vpop.f32.mrb[83].mxu1 }
 0x4df   :  { %1932 = vst [vmem:[#allocation2 + $0xc0] sm:$0xff] %v1878_v14  ;;  %v1881_v8 = vadd.f32 %v3635_v32, %v1880_v20 }
 0x4e0   :  { %1935 = vst [vmem:[#allocation2 + $0xd8] sm:$0xff] %v1889_v22 }
 0x4e1   :  { %1933 = vst [vmem:[#allocation2 + $0xc8] sm:$0xff] %v1881_v8 }
 0x4e3   :  { %v2435_v12 = vpop.f32.mrb[84].mxu1 }
 0x4e4   :  { %v1902_v55 = vadd.f32 %v2435_v12, %v3635_v32  ;;  %v1893_v60 = vpop.f32.mrb[85].mxu1 }
 0x4e5   :  { %v1894_v59 = vadd.f32 %v3635_v32, %v1893_v60  ;;  %v2436_v16 = vpop.f32.mrb[86].mxu1 }
 0x4e6   :  { %1938 = vst [vmem:[#allocation2 + $0xf0] sm:$0xff] %v1902_v55  ;;  %v1905_v21 = vadd.f32 %v2436_v16, %v3635_v32  ;;  %v1896_v23 = vpop.f32.mrb[87].mxu1 }
 0x4e7   :  { %1936 = vst [vmem:[#allocation2 + $0xe0] sm:$0xff] %v1894_v59  ;;  %v1897_v44 = vadd.f32 %v3635_v32, %v1896_v23 }
 0x4e8   :  { %1939 = vst [vmem:[#allocation2 + $0xf8] sm:$0xff] %v1905_v21 }
 0x4e9   :  { %1937 = vst [vmem:[#allocation2 + $0xe8] sm:$0xff] %v1897_v44 }
 0x4ea   :  { %2511 = shalt.err (!%p2508_p4)
}
 0x4eb   :  { %s2512_s21 = scalar_lea.hbm %s3689_s8, 4096 }
 0x4ec   :  { %p2513_p5 = scmp.ne.s32.totalorder %s3689_s8, %s2512_s21  ;;  %p2516_p6 = scmp.lt.u32.totalorder %s2512_s21, %s3689_s8 }
 0x4ee   :  { %p2518_p7 = pnand %p2516_p6, %p2513_p5 }
 0x4f0   :  { %2521 = shalt.err (!%p2518_p7)
}
 0x4f1   :  { %s2525_s25 = smov 128   ;;  %s2526_s26 = smov 8  }
 0x4f2   :  { %1951 = dma.vmem_to_hbm [thread:$0]  %s1946_s19, 4096, %s3689_s8, [#allocation3], %s2525_s25, %s2525_s25, %s2526_s26  }
 0x4f3   :  { %2522 = dma.done.wait [#allocation3], 4096  }
 0x4f4   :  { %2523 = vsyncadd [#allocation3], 4294963200 }
 0x4f5   :  { %1955 = vsyncpa [#allocation3], 1 }

</bundles_post_ra>
